<compile_context>
chip_gen: v5e
topology: v5e:2x2
jax: 0.10.0
libtpu: 0.0.40
codegen_flags: <defaults>
</compile_context>

<pallas_src>
import functools

import jax
import jax.numpy as jnp
from jax.experimental import pallas as pl
from jax.experimental.pallas import tpu as pltpu

INPUT_SIZE = 28 * 28        # 784
INPUT_PAD = 896             # 7 * 128, lane-aligned K for the first matmul
HIDDEN = 512
OUTPUT_SIZE = 10
OUTPUT_PAD = 128            # lane-dense output width


def mlp_kernel(x_ref, w1_ref, b1_ref, w2_ref, b2_ref, w3_ref, b3_ref, o_ref):
    """Fused relu(x@W1+b1) -> relu(@W2+b2) -> @W3+b3 on one batch tile."""
    x = x_ref[...].astype(jnp.bfloat16)
    h1 = jnp.dot(x, w1_ref[...], preferred_element_type=jnp.float32) + b1_ref[...]
    h1 = jnp.maximum(h1, 0.0).astype(jnp.bfloat16)
    h2 = jnp.dot(h1, w2_ref[...], preferred_element_type=jnp.float32) + b2_ref[...]
    h2 = jnp.maximum(h2, 0.0).astype(jnp.bfloat16)
    out = jnp.dot(h2, w3_ref[...], preferred_element_type=jnp.float32) + b3_ref[...]
    o_ref[...] = out.astype(o_ref.dtype)


def prepare_params(params):
    """One-time prep: transpose to (in, out), cast to bf16, lane-pad W1 rows
    (784 -> 896 zero rows) and W3/b3 columns (10 -> 128 zero cols)."""
    w1, b1, w2, b2, w3, b3 = params
    w1_t = jnp.zeros((INPUT_PAD, HIDDEN), jnp.bfloat16)
    w1_t = w1_t.at[:INPUT_SIZE, :].set(w1.T.astype(jnp.bfloat16))
    w2_t = w2.T.astype(jnp.bfloat16)
    w3_t = jnp.zeros((HIDDEN, OUTPUT_PAD), jnp.bfloat16)
    w3_t = w3_t.at[:, :OUTPUT_SIZE].set(w3.T.astype(jnp.bfloat16))
    b1_r = b1.reshape(1, HIDDEN).astype(jnp.float32)
    b2_r = b2.reshape(1, HIDDEN).astype(jnp.float32)
    b3_r = jnp.zeros((1, OUTPUT_PAD), jnp.float32)
    b3_r = b3_r.at[:, :OUTPUT_SIZE].set(b3.astype(jnp.float32))
    return (w1_t, b1_r, w2_t, b2_r, w3_t, b3_r)


@functools.partial(jax.jit, static_argnames=("block_batch",))
def mlp_forward(x, prepared, block_batch=256):
    """x: any shape whose trailing elements flatten to 784 per row (e.g. NCHW
    MNIST (B, 1, 28, 28)). Returns logits (batch, 10)."""
    w1_t, b1_r, w2_t, b2_r, w3_t, b3_r = prepared
    x2d = x.reshape(-1, INPUT_SIZE).astype(jnp.float32)   # torch: x.view(-1, 784)
    batch = x2d.shape[0]

    # Batch tile: multiple of 8 (f32 sublanes), capped at block_batch
    # (256 keeps VMEM footprint well under v7x's 64 MiB with double-buffers).
    tb = min(block_batch, max(8, ((batch + 7) // 8) * 8))
    padded_batch = ((batch + tb - 1) // tb) * tb

    # Zero-pad rows to a tile multiple and K from 784 -> 896 lanes
    # (matching the zero rows appended to W1).
    xp = jnp.zeros((padded_batch, INPUT_PAD), jnp.float32)
    xp = xp.at[:batch, :INPUT_SIZE].set(x2d)

    grid = (padded_batch // tb,)

    def resident(a):
        # Full-array block, same block index every iteration -> stays in VMEM.
        return pl.BlockSpec(a.shape, lambda i: (0, 0))

    out_padded = pl.pallas_call(
        mlp_kernel,
        out_shape=jax.ShapeDtypeStruct((padded_batch, OUTPUT_PAD), jnp.float32),
        grid=grid,
        in_specs=[
            pl.BlockSpec((tb, INPUT_PAD), lambda i: (i, 0)),
            resident(w1_t), resident(b1_r),
            resident(w2_t), resident(b2_r),
            resident(w3_t), resident(b3_r),
        ],
        out_specs=pl.BlockSpec((tb, OUTPUT_PAD), lambda i: (i, 0)),
        compiler_params=pltpu.CompilerParams(
            dimension_semantics=("parallel",),
            vmem_limit_bytes=32 << 20,
        ),
    )(xp, w1_t, b1_r, w2_t, b2_r, w3_t, b3_r)

    return out_padded[:batch, :OUTPUT_SIZE]


def init_params(key):
    """Deterministic init mimicking nn.Linear's U(-1/sqrt(fan_in), +1/sqrt(fan_in))."""
    def linear(key, fan_in, fan_out):
        kw, kb = jax.random.split(key)
        bound = 1.0 / jnp.sqrt(fan_in)
        w = jax.random.uniform(kw, (fan_out, fan_in), jnp.float32, -bound, bound)
        b = jax.random.uniform(kb, (fan_out,), jnp.float32, -bound, bound)
        return w, b

    k1, k2, k3 = jax.random.split(key, 3)
    w1, b1 = linear(k1, INPUT_SIZE, HIDDEN)
    w2, b2 = linear(k2, HIDDEN, HIDDEN)
    w3, b3 = linear(k3, HIDDEN, OUTPUT_SIZE)
    return (w1, b1, w2, b2, w3, b3)


def mlp_reference(x, params):
    w1, b1, w2, b2, w3, b3 = params
    x2d = x.reshape(-1, INPUT_SIZE)
    h1 = jnp.maximum(x2d @ w1.T + b1, 0.0)
    h2 = jnp.maximum(h1 @ w2.T + b2, 0.0)
    return h2 @ w3.T + b3


if __name__ == "__main__":
    key = jax.random.PRNGKey(0)
    kx, kp = jax.random.split(key)
    # Small MNIST-like input: batch=2, channels=1, 28x28 (NCHW).
    x = jax.random.normal(kx, (2, 1, 28, 28), jnp.float32)
    params = init_params(kp)
    prepared = prepare_params(params)

    out = mlp_forward(x, prepared)
    out = jax.block_until_ready(out)

    ref = mlp_reference(x, params)
    assert out.shape == (2, OUTPUT_SIZE), out.shape
    # bf16 MXU operands with f32 accumulation -> loosened tolerance vs f32 ref.
    assert jnp.allclose(out, ref, atol=5e-2, rtol=5e-2), "mismatch vs reference"
    print("KERNEL_OK")
</pallas_src>

<mosaic_0001>
module attributes {stable_mosaic.version = 11 : i64} {
  func.func @mlp_kernel(%arg0: i32, %arg1: memref<8x896xf32, #tpu.memory_space<vmem>>, %arg2: memref<896x512xbf16, #tpu.memory_space<vmem>>, %arg3: memref<1x512xf32, #tpu.memory_space<vmem>>, %arg4: memref<512x512xbf16, #tpu.memory_space<vmem>>, %arg5: memref<1x512xf32, #tpu.memory_space<vmem>>, %arg6: memref<512x128xbf16, #tpu.memory_space<vmem>>, %arg7: memref<1x128xf32, #tpu.memory_space<vmem>>, %arg8: memref<8x128xf32, #tpu.memory_space<vmem>>) attributes {dimension_semantics = [#tpu.dimension_semantics<parallel>], iteration_bounds = array<i64: 1>, scalar_prefetch = 0 : i64, scratch_operands = 0 : i64, tpu.core_type = #tpu.core_type<tc>, window_params = [{transform_indices = @transform_0, window_bounds = array<i64: 8, 896>}, {pipeline_mode = #tpu.pipeline_mode<synchronous>, transform_indices = @transform_1, window_bounds = array<i64: 896, 512>}, {pipeline_mode = #tpu.pipeline_mode<synchronous>, transform_indices = @transform_2, window_bounds = array<i64: 1, 512>}, {pipeline_mode = #tpu.pipeline_mode<synchronous>, transform_indices = @transform_3, window_bounds = array<i64: 512, 512>}, {pipeline_mode = #tpu.pipeline_mode<synchronous>, transform_indices = @transform_4, window_bounds = array<i64: 1, 512>}, {pipeline_mode = #tpu.pipeline_mode<synchronous>, transform_indices = @transform_5, window_bounds = array<i64: 512, 128>}, {pipeline_mode = #tpu.pipeline_mode<synchronous>, transform_indices = @transform_6, window_bounds = array<i64: 1, 128>}, {transform_indices = @transform_7, window_bounds = array<i64: 8, 128>}]} {
    %c0 = arith.constant 0 : index
    %c0_0 = arith.constant 0 : index
    %0 = vector.load %arg1[%c0, %c0_0] : memref<8x896xf32, #tpu.memory_space<vmem>>, vector<8x896xf32>
    %1 = arith.truncf %0 : vector<8x896xf32> to vector<8x896xbf16>
    %c0_1 = arith.constant 0 : index
    %c0_2 = arith.constant 0 : index
    %2 = vector.load %arg2[%c0_1, %c0_2] : memref<896x512xbf16, #tpu.memory_space<vmem>>, vector<896x512xbf16>
    %cst = arith.constant dense<0.000000e+00> : vector<8x512xf32>
    %3 = tpu.matmul %1, %2, %cst {dimension_numbers = #tpu.dot_dimension_numbers<[1], [0], [0], [1], [0, 0, 1, 1], [], []>} : vector<8x896xbf16>, vector<896x512xbf16>, vector<8x512xf32> -> vector<8x512xf32>
    %c0_3 = arith.constant 0 : index
    %c0_4 = arith.constant 0 : index
    %4 = vector.load %arg3[%c0_3, %c0_4] : memref<1x512xf32, #tpu.memory_space<vmem>>, vector<1x512xf32>
    %5 = vector.broadcast %4 : vector<1x512xf32> to vector<8x512xf32>
    %6 = arith.addf %3, %5 : vector<8x512xf32>
    %cst_5 = arith.constant 0.000000e+00 : f32
    %7 = vector.broadcast %cst_5 : f32 to vector<8x512xf32>
    %8 = arith.maximumf %6, %7 : vector<8x512xf32>
    %9 = arith.truncf %8 : vector<8x512xf32> to vector<8x512xbf16>
    %c0_6 = arith.constant 0 : index
    %c0_7 = arith.constant 0 : index
    %10 = vector.load %arg4[%c0_6, %c0_7] : memref<512x512xbf16, #tpu.memory_space<vmem>>, vector<512x512xbf16>
    %cst_8 = arith.constant dense<0.000000e+00> : vector<8x512xf32>
    %11 = tpu.matmul %9, %10, %cst_8 {dimension_numbers = #tpu.dot_dimension_numbers<[1], [0], [0], [1], [0, 0, 1, 1], [], []>} : vector<8x512xbf16>, vector<512x512xbf16>, vector<8x512xf32> -> vector<8x512xf32>
    %c0_9 = arith.constant 0 : index
    %c0_10 = arith.constant 0 : index
    %12 = vector.load %arg5[%c0_9, %c0_10] : memref<1x512xf32, #tpu.memory_space<vmem>>, vector<1x512xf32>
    %13 = vector.broadcast %12 : vector<1x512xf32> to vector<8x512xf32>
    %14 = arith.addf %11, %13 : vector<8x512xf32>
    %cst_11 = arith.constant 0.000000e+00 : f32
    %15 = vector.broadcast %cst_11 : f32 to vector<8x512xf32>
    %16 = arith.maximumf %14, %15 : vector<8x512xf32>
    %17 = arith.truncf %16 : vector<8x512xf32> to vector<8x512xbf16>
    %c0_12 = arith.constant 0 : index
    %c0_13 = arith.constant 0 : index
    %18 = vector.load %arg6[%c0_12, %c0_13] : memref<512x128xbf16, #tpu.memory_space<vmem>>, vector<512x128xbf16>
    %cst_14 = arith.constant dense<0.000000e+00> : vector<8x128xf32>
    %19 = tpu.matmul %17, %18, %cst_14 {dimension_numbers = #tpu.dot_dimension_numbers<[1], [0], [0], [1], [0, 0, 1, 1], [], []>} : vector<8x512xbf16>, vector<512x128xbf16>, vector<8x128xf32> -> vector<8x128xf32>
    %c0_15 = arith.constant 0 : index
    %c0_16 = arith.constant 0 : index
    %20 = vector.load %arg7[%c0_15, %c0_16] : memref<1x128xf32, #tpu.memory_space<vmem>>, vector<1x128xf32>
    %21 = vector.broadcast %20 : vector<1x128xf32> to vector<8x128xf32>
    %22 = arith.addf %19, %21 : vector<8x128xf32>
    %c0_17 = arith.constant 0 : index
    %c0_18 = arith.constant 0 : index
    %23 = vector.load %arg8[%c0_17, %c0_18] : memref<8x128xf32, #tpu.memory_space<vmem>>, vector<8x128xf32>
    tpu.vector_store %arg8[%c0_17, %c0_18], %22 {strides = array<i32>} : memref<8x128xf32, #tpu.memory_space<vmem>>, vector<8x128xf32>,
    return
  }
  func.func @transform_0(%arg0: i32) -> (i32, i32) {
    %c0_i32 = arith.constant 0 : i32
    %c0_i32_0 = arith.constant 0 : i32
    return %arg0, %c0_i32 : i32, i32
  }
  func.func @transform_1(%arg0: i32) -> (i32, i32) {
    %c0_i32 = arith.constant 0 : i32
    %c0_i32_0 = arith.constant 0 : i32
    %c0_i32_1 = arith.constant 0 : i32
    return %c0_i32, %c0_i32_0 : i32, i32
  }
  func.func @transform_2(%arg0: i32) -> (i32, i32) {
    %c0_i32 = arith.constant 0 : i32
    %c0_i32_0 = arith.constant 0 : i32
    %c0_i32_1 = arith.constant 0 : i32
    return %c0_i32, %c0_i32_0 : i32, i32
  }
  func.func @transform_3(%arg0: i32) -> (i32, i32) {
    %c0_i32 = arith.constant 0 : i32
    %c0_i32_0 = arith.constant 0 : i32
    %c0_i32_1 = arith.constant 0 : i32
    return %c0_i32, %c0_i32_0 : i32, i32
  }
  func.func @transform_4(%arg0: i32) -> (i32, i32) {
    %c0_i32 = arith.constant 0 : i32
    %c0_i32_0 = arith.constant 0 : i32
    %c0_i32_1 = arith.constant 0 : i32
    return %c0_i32, %c0_i32_0 : i32, i32
  }
  func.func @transform_5(%arg0: i32) -> (i32, i32) {
    %c0_i32 = arith.constant 0 : i32
    %c0_i32_0 = arith.constant 0 : i32
    %c0_i32_1 = arith.constant 0 : i32
    return %c0_i32, %c0_i32_0 : i32, i32
  }
  func.func @transform_6(%arg0: i32) -> (i32, i32) {
    %c0_i32 = arith.constant 0 : i32
    %c0_i32_0 = arith.constant 0 : i32
    %c0_i32_1 = arith.constant 0 : i32
    return %c0_i32, %c0_i32_0 : i32, i32
  }
  func.func @transform_7(%arg0: i32) -> (i32, i32) {
    %c0_i32 = arith.constant 0 : i32
    %c0_i32_0 = arith.constant 0 : i32
    return %arg0, %c0_i32 : i32, i32
  }
}

</mosaic_0001>

<bundles_post_ra>
// kernel: mlp_forward.1
= control target key start
LH: loop header
LB: loop body
LE: loop exit
PB: predicated region body
PF: predicated region fallthrough
CT: control target
= control target key end

     0   :  { %12 = vsyncpa [#allocation3], 0  ;;  %s5414_s0 = inlined_call_operand.vmem [shape: f32[8,896], index: 0, kind: input, shape index: {}]   ;;  %s5415_s1 = inlined_call_operand.hbm [shape: bf16[896,512], index: 1, kind: input, shape index: {}]   ;;  %s5416_s2 = inlined_call_operand.vmem [shape: f32[1,512], index: 2, kind: input, shape index: {}]   ;;  %s5417_s3 = inlined_call_operand.hbm [shape: bf16[512,512], index: 3, kind: input, shape index: {}]   ;;  %s5418_s4 = inlined_call_operand.vmem [shape: f32[1,512], index: 4, kind: input, shape index: {}]   ;;  %s5419_s5 = inlined_call_operand.vmem [shape: bf16[512,128], index: 5, kind: input, shape index: {}]   ;;  %s5420_s6 = inlined_call_operand.vmem [shape: f32[1,128], index: 6, kind: input, shape index: {}]   ;;  %s5421_s7 = inlined_call_operand.vmem [shape: f32[8,128], index: 7, kind: output, shape index: {}]  }
   0x1   :  { %s20_s26 = sshll.u32 %s5415_s1, 4  ;;  %s21_s26 = int_to_ptr.hbm [resolvable:$true] %s20_s26 }
   0x2   :  { %13 = vsyncpa [#allocation5], 0  ;;  %s5089_s27 = smov [#allocation2]   ;;  %s35_s8 = sshll.u32 %s5417_s3, 4  ;;  %s36_s8 = int_to_ptr.hbm [resolvable:$true] %s35_s8 }
   0x3   :  { %s22_s28 = sshll.u32 %s5089_s27, 4  ;;  %s5090_s9 = smov 256   ;;  %s23_s28 = int_to_ptr.vmem [resolvable:$true] %s22_s28 }
   0x4   :  { %s5091_s10 = smov 16   ;;  %s5092_s11 = smov [#allocation4]  }
   0x5   :  { %28 = dma.hbm_to_vmem [thread:$0]  %s21_s26, 28672, %s23_s28, [#allocation3], %s5090_s9, %s5090_s9, %s5091_s10  }
   0x6   :  { %s37_s12 = sshll.u32 %s5092_s11, 4  ;;  %s38_s12 = int_to_ptr.vmem [resolvable:$true] %s37_s12 }
   0x7   :  { %43 = dma.hbm_to_vmem [thread:$0]  %s36_s8, 16384, %s38_s12, [#allocation5], %s5090_s9, %s5090_s9, %s5091_s10  }
   0x8   :  { %5085 = dma.done.wait [#allocation3], 28672  }
   0x9   :  { %5086 = vsyncadd [#allocation3], 4294938624 }
   0xa   :  { %5087 = dma.done.wait [#allocation5], 16384  }
   0xb   :  { %5088 = vsyncadd [#allocation5], 4294950912  ;;  %v3225_v0 = vld [vmem:[#allocation2 + $0xe0] sm:$0xf]  ;;  %v4677_v1 = vld [vmem:[#allocation2 + $0xec] sm:$0xf0] }
   0xc   :  { %v3353_v2 = vld [vmem:[#allocation2 + $0x1e0] sm:$0xf]  ;;  %v3226_v3 = vor.u32 %v4677_v1, %v3225_v0  ;;  %v4709_v4 = vld [vmem:[#allocation2 + $0x1ec] sm:$0xf0] }
   0xd   :  { %v3481_v5 = vld [vmem:[#allocation2 + $0x2e0] sm:$0xf]  ;;  %v4741_v6 = vld [vmem:[#allocation2 + $0x2ec] sm:$0xf0]  ;;  %v3354_v7 = vor.u32 %v4709_v4, %v3353_v2 }
   0xe   :  { %v3482_v8 = vor.u32 %v4741_v6, %v3481_v5  ;;  %v3609_v9 = vld [vmem:[#allocation2 + $0x3e0] sm:$0xf]  ;;  %v4773_v10 = vld [vmem:[#allocation2 + $0x3ec] sm:$0xf0]  ;;  %1426 = vmatpush.bf16.msra.mxu0 %v3226_v3 }
   0xf   :  { %v3209_v11 = vld [vmem:[#allocation2 + $0xc0] sm:$0xf]  ;;  %v3610_v12 = vor.u32 %v4773_v10, %v3609_v9  ;;  %v4673_v13 = vld [vmem:[#allocation2 + $0xcc] sm:$0xf0]  ;;  %1439 = vmatpush.bf16.msra.mxu1 %v3354_v7 }
  0x10   :  { %v3337_v14 = vld [vmem:[#allocation2 + $0x1c0] sm:$0xf]  ;;  %v4705_v15 = vld [vmem:[#allocation2 + $0x1cc] sm:$0xf0]  ;;  %1452 = vmatpush.bf16.msra.mxu2 %v3482_v8  ;;  %v3210_v16 = vor.u32 %v4673_v13, %v3209_v11 }
  0x11   :  { %v3338_v17 = vor.u32 %v4705_v15, %v3337_v14  ;;  %v3465_v18 = vld [vmem:[#allocation2 + $0x2c0] sm:$0xf]  ;;  %v4737_v19 = vld [vmem:[#allocation2 + $0x2cc] sm:$0xf0]  ;;  %1465 = vmatpush.bf16.msra.mxu3 %v3610_v12 }
  0x12   :  { %v3593_v20 = vld [vmem:[#allocation2 + $0x3c0] sm:$0xf]  ;;  %v3466_v21 = vor.u32 %v4737_v19, %v3465_v18  ;;  %v4769_v22 = vld [vmem:[#allocation2 + $0x3cc] sm:$0xf0]  ;;  %1427 = vmatpush.bf16.msra.mxu0 %v3210_v16 }
  0x13   :  { %v3193_v23 = vld [vmem:[#allocation2 + $0xa0] sm:$0xf]  ;;  %v4669_v24 = vld [vmem:[#allocation2 + $0xac] sm:$0xf0]  ;;  %v3594_v25 = vor.u32 %v4769_v22, %v3593_v20  ;;  %1440 = vmatpush.bf16.msra.mxu1 %v3338_v17 }
  0x14   :  { %v3321_v26 = vld [vmem:[#allocation2 + $0x1a0] sm:$0xf]  ;;  %v4701_v27 = vld [vmem:[#allocation2 + $0x1ac] sm:$0xf0]  ;;  %v3194_v29 = vor.u32 %v4669_v24, %v3193_v23  ;;  %1453 = vmatpush.bf16.msra.mxu2 %v3466_v21 }
  0x15   :  { %v3449_v28 = vld [vmem:[#allocation2 + $0x2a0] sm:$0xf]  ;;  %v4733_v30 = vld [vmem:[#allocation2 + $0x2ac] sm:$0xf0]  ;;  %v3322_v33 = vor.u32 %v4701_v27, %v3321_v26  ;;  %1466 = vmatpush.bf16.msra.mxu3 %v3594_v25 }
  0x16   :  { %v3577_v31 = vld [vmem:[#allocation2 + $0x3a0] sm:$0xf]  ;;  %v4765_v32 = vld [vmem:[#allocation2 + $0x3ac] sm:$0xf0]  ;;  %v3450_v34 = vor.u32 %v4733_v30, %v3449_v28  ;;  %1428 = vmatpush.bf16.msra.mxu0 %v3194_v29 }
  0x17   :  { %v3177_v35 = vld [vmem:[#allocation2 + $0x80] sm:$0xf]  ;;  %v4665_v36 = vld [vmem:[#allocation2 + $0x8c] sm:$0xf0]  ;;  %v3578_v38 = vor.u32 %v4765_v32, %v3577_v31  ;;  %1441 = vmatpush.bf16.msra.mxu1 %v3322_v33 }
  0x18   :  { %v3305_v37 = vld [vmem:[#allocation2 + $0x180] sm:$0xf]  ;;  %v4697_v39 = vld [vmem:[#allocation2 + $0x18c] sm:$0xf0]  ;;  %v3178_v44 = vor.u32 %v4665_v36, %v3177_v35  ;;  %1454 = vmatpush.bf16.msra.mxu2 %v3450_v34 }
  0x19   :  { %v3433_v40 = vld [vmem:[#allocation2 + $0x280] sm:$0xf]  ;;  %v4729_v41 = vld [vmem:[#allocation2 + $0x28c] sm:$0xf0]  ;;  %v3306_v45 = vor.u32 %v4697_v39, %v3305_v37  ;;  %1467 = vmatpush.bf16.msra.mxu3 %v3578_v38  ;;  %v4675_v37 = vld [vmem:[#allocation2 + $0xe4] sm:$0xf] }
  0x1a   :  { %v3561_v42 = vld [vmem:[#allocation2 + $0x380] sm:$0xf]  ;;  %v4761_v43 = vld [vmem:[#allocation2 + $0x38c] sm:$0xf0]  ;;  %v3434_v46 = vor.u32 %v4729_v41, %v3433_v40  ;;  %1429 = vmatpush.bf16.msra.mxu0 %v3178_v44  ;;  %v3227_v38 = vld [vmem:[#allocation2 + $0xf0] sm:$0xf0] }
  0x1b   :  { %v3161_v47 = vld [vmem:[#allocation2 + $0x60] sm:$0xf]  ;;  %v4661_v48 = vld [vmem:[#allocation2 + $0x6c] sm:$0xf0]  ;;  %v3562_v50 = vor.u32 %v4761_v43, %v3561_v42  ;;  %1442 = vmatpush.bf16.msra.mxu1 %v3306_v45 }
  0x1c   :  { %v3289_v49 = vld [vmem:[#allocation2 + $0x160] sm:$0xf]  ;;  %v4693_v51 = vld [vmem:[#allocation2 + $0x16c] sm:$0xf0]  ;;  %v3162_v56 = vor.u32 %v4661_v48, %v3161_v47  ;;  %1455 = vmatpush.bf16.msra.mxu2 %v3434_v46  ;;  %v3230_v46 = vor.u32 %v4675_v37, %v3227_v38 }
  0x1d   :  { %v3417_v52 = vld [vmem:[#allocation2 + $0x260] sm:$0xf]  ;;  %v4725_v53 = vld [vmem:[#allocation2 + $0x26c] sm:$0xf0]  ;;  %v3290_v57 = vor.u32 %v4693_v51, %v3289_v49  ;;  %1468 = vmatpush.bf16.msra.mxu3 %v3562_v50  ;;  %v4671_v50 = vld [vmem:[#allocation2 + $0xc4] sm:$0xf] }
  0x1e   :  { %v3545_v54 = vld [vmem:[#allocation2 + $0x360] sm:$0xf]  ;;  %v4757_v55 = vld [vmem:[#allocation2 + $0x36c] sm:$0xf0]  ;;  %v3418_v58 = vor.u32 %v4725_v53, %v3417_v52  ;;  %1430 = vmatpush.bf16.msra.mxu0 %v3162_v56  ;;  %v3211_v51 = vld [vmem:[#allocation2 + $0xd0] sm:$0xf0] }
  0x1f   :  { %v3145_v59 = vld [vmem:[#allocation2 + $0x40] sm:$0xf]  ;;  %v4657_v60 = vld [vmem:[#allocation2 + $0x4c] sm:$0xf0]  ;;  %v3546_v62 = vor.u32 %v4757_v55, %v3545_v54  ;;  %1443 = vmatpush.bf16.msra.mxu1 %v3290_v57 }
  0x20   :  { %v3273_v61 = vld [vmem:[#allocation2 + $0x140] sm:$0xf]  ;;  %v4689_v63 = vld [vmem:[#allocation2 + $0x14c] sm:$0xf0]  ;;  %v3146_v4 = vor.u32 %v4657_v60, %v3145_v59  ;;  %1456 = vmatpush.bf16.msra.mxu2 %v3418_v58  ;;  %v3214_v59 = vor.u32 %v4671_v50, %v3211_v51 }
  0x21   :  { %v3401_v0 = vld [vmem:[#allocation2 + $0x240] sm:$0xf]  ;;  %v4721_v1 = vld [vmem:[#allocation2 + $0x24c] sm:$0xf0]  ;;  %v3274_v5 = vor.u32 %v4689_v63, %v3273_v61  ;;  %1469 = vmatpush.bf16.msra.mxu3 %v3546_v62  ;;  %v4667_v62 = vld [vmem:[#allocation2 + $0xa4] sm:$0xf] }
  0x22   :  { %v3529_v2 = vld [vmem:[#allocation2 + $0x340] sm:$0xf]  ;;  %v4753_v3 = vld [vmem:[#allocation2 + $0x34c] sm:$0xf0]  ;;  %v3402_v6 = vor.u32 %v4721_v1, %v3401_v0  ;;  %1431 = vmatpush.bf16.msra.mxu0 %v3146_v4  ;;  %v3195_v63 = vld [vmem:[#allocation2 + $0xb0] sm:$0xf0] }
  0x23   :  { %v3129_v7 = vld [vmem:[#allocation2 + $0x20] sm:$0xf]  ;;  %v4653_v8 = vld [vmem:[#allocation2 + $0x2c] sm:$0xf0]  ;;  %v3530_v10 = vor.u32 %v4753_v3, %v3529_v2  ;;  %1444 = vmatpush.bf16.msra.mxu1 %v3274_v5 }
  0x24   :  { %v3257_v9 = vld [vmem:[#allocation2 + $0x120] sm:$0xf]  ;;  %v4685_v11 = vld [vmem:[#allocation2 + $0x12c] sm:$0xf0]  ;;  %v3130_v16 = vor.u32 %v4653_v8, %v3129_v7  ;;  %1457 = vmatpush.bf16.msra.mxu2 %v3402_v6 }
  0x25   :  { %v3385_v12 = vld [vmem:[#allocation2 + $0x220] sm:$0xf]  ;;  %v4717_v13 = vld [vmem:[#allocation2 + $0x22c] sm:$0xf0]  ;;  %v3258_v19 = vor.u32 %v4685_v11, %v3257_v9  ;;  %1470 = vmatpush.bf16.msra.mxu3 %v3530_v10  ;;  %v61_v10 = vld [vmem:[%s5414_s0 + $0x18] sm:$0xff]  ;;  %v3198_v11 = vor.u32 %v4667_v62, %v3195_v63 }
  0x26   :  { %v3513_v14 = vld [vmem:[#allocation2 + $0x320] sm:$0xf]  ;;  %v4749_v15 = vld [vmem:[#allocation2 + $0x32c] sm:$0xf0]  ;;  %v3386_v20 = vor.u32 %v4717_v13, %v3385_v12  ;;  %1432 = vmatpush.bf16.msra.mxu0 %v3130_v16  ;;  %v4663_v16 = vld [vmem:[#allocation2 + $0x84] sm:$0xf] }
  0x27   :  { %v3113_v17 = vld [vmem:[#allocation2] sm:$0xf]  ;;  %v4649_v18 = vld [vmem:[#allocation2 + $0xc] sm:$0xf0]  ;;  %v3514_v24 = vor.u32 %v4749_v15, %v3513_v14  ;;  %1445 = vmatpush.bf16.msra.mxu1 %v3258_v19  ;;  %v5152_v15 = vpack.c.bf16 %v61_v10, %v61_v10  ;;  %v59_v19 = vld [vmem:[%s5414_s0 + $0x8] sm:$0xff] }
  0x28   :  { %v3241_v21 = vld [vmem:[#allocation2 + $0x100] sm:$0xf]  ;;  %v4681_v22 = vld [vmem:[#allocation2 + $0x10c] sm:$0xf0]  ;;  %v3114_v31 = vor.u32 %v4649_v18, %v3113_v17  ;;  %1458 = vmatpush.bf16.msra.mxu2 %v3386_v20  ;;  %v3179_v17 = vld [vmem:[#allocation2 + $0x90] sm:$0xf0] }
  0x29   :  { %v3369_v23 = vld [vmem:[#allocation2 + $0x200] sm:$0xf]  ;;  %v4713_v25 = vld [vmem:[#allocation2 + $0x20c] sm:$0xf0]  ;;  %v3242_v35 = vor.u32 %v4681_v22, %v3241_v21  ;;  %1471 = vmatpush.bf16.msra.mxu3 %v3514_v24  ;;  %v3483_v10 = vld [vmem:[#allocation2 + $0x2f0] sm:$0xf0] }
  0x2a   :  { %v3497_v26 = vld [vmem:[#allocation2 + $0x300] sm:$0xf]  ;;  %v4745_v27 = vld [vmem:[#allocation2 + $0x30c] sm:$0xf0]  ;;  %v3370_v36 = vor.u32 %v4713_v25, %v3369_v23  ;;  %1433 = vmatpush.bf16.msra.mxu0 %v3114_v31  ;;  %v5160_v25 = vpack.c.bf16 %v59_v19, %v59_v19  ;;  %v3163_v31 = vld [vmem:[#allocation2 + $0x70] sm:$0xf0] }
  0x2b   :  { %v3737_v28 = vld [vmem:[#allocation2 + $0x4e0] sm:$0xf]  ;;  %v4805_v29 = vld [vmem:[#allocation2 + $0x4ec] sm:$0xf0]  ;;  %v3498_v39 = vor.u32 %v4745_v27, %v3497_v26  ;;  %1446 = vmatpush.bf16.msra.mxu1 %v3242_v35  ;;  %v3182_v26 = vor.u32 %v4663_v16, %v3179_v17  ;;  %v4803_v16 = vld [vmem:[#allocation2 + $0x4e4] sm:$0xf] }
  0x2c   :  { %v3865_v30 = vld [vmem:[#allocation2 + $0x5e0] sm:$0xf]  ;;  %v4837_v32 = vld [vmem:[#allocation2 + $0x5ec] sm:$0xf0]  ;;  %v3738_v40 = vor.u32 %v4805_v29, %v3737_v28  ;;  %1459 = vmatpush.bf16.msra.mxu2 %v3370_v36  ;;  %v3739_v17 = vld [vmem:[#allocation2 + $0x4f0] sm:$0xf0] }
  0x2d   :  { %v3993_v33 = vld [vmem:[#allocation2 + $0x6e0] sm:$0xf]  ;;  %v4869_v34 = vld [vmem:[#allocation2 + $0x6ec] sm:$0xf0]  ;;  %v3866_v41 = vor.u32 %v4837_v32, %v3865_v30  ;;  %1472 = vmatpush.bf16.msra.mxu3 %v3498_v39  ;;  %v4659_v30 = vld [vmem:[#allocation2 + $0x64] sm:$0xf] }
  0x2e   :  { %v3994_v42 = vor.u32 %v4869_v34, %v3993_v33  ;;  %v3721_v43 = vld [vmem:[#allocation2 + $0x4c0] sm:$0xf]  ;;  %v4801_v44 = vld [vmem:[#allocation2 + $0x4cc] sm:$0xf0]  ;;  %1478 = vmatpush.bf16.msrb.mxu0 %v3738_v40  ;;  %1447 = vmatmul.bf16.vlgmr.msra.gmra.mxu1 %v5160_v25  ;;  %v3166_v38 = vor.u32 %v4659_v30, %v3163_v31  ;;  %v3467_v30 = vld [vmem:[#allocation2 + $0x2d0] sm:$0xf0] }
  0x2f   :  { %v3849_v45 = vld [vmem:[#allocation2 + $0x5c0] sm:$0xf]  ;;  %v4833_v47 = vld [vmem:[#allocation2 + $0x5cc] sm:$0xf0]  ;;  %v3722_v52 = vor.u32 %v4801_v44, %v3721_v43  ;;  %1491 = vmatpush.bf16.msrb.mxu1 %v3866_v41  ;;  %v3147_v43 = vld [vmem:[#allocation2 + $0x50] sm:$0xf0] }
  0x30   :  { %v3977_v48 = vld [vmem:[#allocation2 + $0x6c0] sm:$0xf]  ;;  %v4865_v49 = vld [vmem:[#allocation2 + $0x6cc] sm:$0xf0]  ;;  %1504 = vmatpush.bf16.msrb.mxu2 %v3994_v42  ;;  %v3850_v54 = vor.u32 %v4833_v47, %v3849_v45  ;;  %1473 = vmatmul.bf16.vlgmr.msra.gmra.mxu3 %v5152_v15  ;;  %v4655_v42 = vld [vmem:[#allocation2 + $0x44] sm:$0xf] }
  0x31   :  { %v3705_v53 = vld [vmem:[#allocation2 + $0x4a0] sm:$0xf]  ;;  %v3978_v55 = vor.u32 %v4865_v49, %v3977_v48  ;;  %v4797_v56 = vld [vmem:[#allocation2 + $0x4ac] sm:$0xf0]  ;;  %1517 = vmatpush.bf16.msrb.mxu3 %v3230_v46  ;;  %v3150_v50 = vor.u32 %v4655_v42, %v3147_v43  ;;  %v4767_v31 = vld [vmem:[#allocation2 + $0x3c4] sm:$0xf] }
  0x32   :  { %v3833_v57 = vld [vmem:[#allocation2 + $0x5a0] sm:$0xf]  ;;  %v4829_v58 = vld [vmem:[#allocation2 + $0x5ac] sm:$0xf0]  ;;  %1479 = vmatpush.bf16.msrb.mxu0 %v3722_v52  ;;  %v3706_v0 = vor.u32 %v4797_v56, %v3705_v53  ;;  %v3323_v42 = vld [vmem:[#allocation2 + $0x1b0] sm:$0xf0] }
  0x33   :  { %v3961_v60 = vld [vmem:[#allocation2 + $0x6a0] sm:$0xf]  ;;  %v4861_v61 = vld [vmem:[#allocation2 + $0x6ac] sm:$0xf0]  ;;  %v3834_v1 = vor.u32 %v4829_v58, %v3833_v57  ;;  %1492 = vmatpush.bf16.msrb.mxu1 %v3850_v54  ;;  %v4651_v54 = vld [vmem:[#allocation2 + $0x24] sm:$0xf] }
  0x34   :  { %v3689_v2 = vld [vmem:[#allocation2 + $0x480] sm:$0xf]  ;;  %v60_v3 = vld [vmem:[%s5414_s0 + $0x10] sm:$0xff]  ;;  %1505 = vmatpush.bf16.msrb.mxu2 %v3978_v55  ;;  %v3962_v5 = vor.u32 %v4861_v61, %v3961_v60  ;;  %v4731_v43 = vld [vmem:[#allocation2 + $0x2a4] sm:$0xf] }
  0x35   :  { %v58_v4 = vld [vmem:[%s5414_s0] sm:$0xff]  ;;  %v4793_v6 = vld [vmem:[#allocation2 + $0x48c] sm:$0xf0]  ;;  %v5145_v8 = vpack.c.bf16 %v60_v3, %v60_v3  ;;  %1518 = vmatpush.bf16.msrb.mxu3 %v3214_v59  ;;  %v3131_v55 = vld [vmem:[#allocation2 + $0x30] sm:$0xf0] }
  0x36   :  { %v3817_v7 = vld [vmem:[#allocation2 + $0x580] sm:$0xf]  ;;  %v5147_v9 = vpack.c.bf16 %v58_v4, %v58_v4  ;;  %v4825_v12 = vld [vmem:[#allocation2 + $0x58c] sm:$0xf0]  ;;  %1480 = vmatpush.bf16.msrb.mxu0 %v3706_v0  ;;  %v3690_v18 = vor.u32 %v4793_v6, %v3689_v2  ;;  %v3134_v0 = vor.u32 %v4651_v54, %v3131_v55  ;;  %v4647_v2 = vld [vmem:[#allocation2 + $0x4] sm:$0xf] }
  0x37   :  { %v3945_v13 = vld [vmem:[#allocation2 + $0x680] sm:$0xf]  ;;  %v4857_v14 = vld [vmem:[#allocation2 + $0x68c] sm:$0xf0]  ;;  %1460 = vmatmul.bf16.vlgmr.msra.gmra.mxu2 %v5145_v8  ;;  %1493 = vmatpush.bf16.msrb.mxu1 %v3834_v1  ;;  %v3818_v20 = vor.u32 %v4825_v12, %v3817_v7  ;;  %v3115_v3 = vld [vmem:[#allocation2 + $0x10] sm:$0xf0] }
  0x38   :  { %1434 = vmatmul.bf16.vlgmr.msra.gmra.mxu0 %v5147_v9  ;;  %1506 = vmatpush.bf16.msrb.mxu2 %v3962_v5  ;;  %v3946_v21 = vor.u32 %v4857_v14, %v3945_v13  ;;  %v3673_v22 = vld [vmem:[#allocation2 + $0x460] sm:$0xf]  ;;  %v4789_v23 = vld [vmem:[#allocation2 + $0x46c] sm:$0xf0]  ;;  %v4707_v4 = vld [vmem:[#allocation2 + $0x1e4] sm:$0xf]  ;;  %v3118_v19 = vor.u32 %v4647_v2, %v3115_v3 }
  0x39   :  { %v3801_v24 = vld [vmem:[#allocation2 + $0x560] sm:$0xf]  ;;  %1519 = vmatpush.bf16.msrb.mxu3 %v3198_v11  ;;  %v4821_v27 = vld [vmem:[#allocation2 + $0x56c] sm:$0xf0]  ;;  %v3674_v32 = vor.u32 %v4789_v23, %v3673_v22  ;;  %v3355_v5 = vld [vmem:[#allocation2 + $0x1f0] sm:$0xf0] }
  0x3a   :  { %v3929_v28 = vld [vmem:[#allocation2 + $0x660] sm:$0xf]  ;;  %v4853_v29 = vld [vmem:[#allocation2 + $0x66c] sm:$0xf0]  ;;  %1481 = vmatpush.bf16.msrb.mxu0 %v3690_v18  ;;  %v3802_v33 = vor.u32 %v4821_v27, %v3801_v24  ;;  %v4739_v6 = vld [vmem:[#allocation2 + $0x2e4] sm:$0xf] }
  0x3b   :  { %1494 = vmatpush.bf16.msrb.mxu1 %v3818_v20  ;;  %v3930_v34 = vor.u32 %v4853_v29, %v3929_v28  ;;  %v3657_v35 = vld [vmem:[#allocation2 + $0x440] sm:$0xf]  ;;  %v4785_v36 = vld [vmem:[#allocation2 + $0x44c] sm:$0xf0]  ;;  %v4771_v11 = vld [vmem:[#allocation2 + $0x3e4] sm:$0xf]  ;;  %v3358_v20 = vor.u32 %v4707_v4, %v3355_v5  ;;  %v3486_v23 = vor.u32 %v4739_v6, %v3483_v10  ;;  %v3742_v29 = vor.u32 %v4803_v16, %v3739_v17 }
  0x3c   :  { %1507 = vmatpush.bf16.msrb.mxu2 %v3946_v21  ;;  %v3785_v37 = vld [vmem:[#allocation2 + $0x540] sm:$0xf]  ;;  %v4817_v39 = vld [vmem:[#allocation2 + $0x54c] sm:$0xf0]  ;;  %v3658_v44 = vor.u32 %v4785_v36, %v3657_v35  ;;  %v3611_v12 = vld [vmem:[#allocation2 + $0x3f0] sm:$0xf0] }
  0x3d   :  { %1520 = vmatpush.bf16.msrb.mxu3 %v3182_v26  ;;  %v3913_v40 = vld [vmem:[#allocation2 + $0x640] sm:$0xf]  ;;  %v4849_v41 = vld [vmem:[#allocation2 + $0x64c] sm:$0xf0]  ;;  %v3786_v45 = vor.u32 %v4817_v39, %v3785_v37  ;;  %v63_v22 = vld [vmem:[%s5414_s0 + $0x28] sm:$0xff]  ;;  %v3614_v24 = vor.u32 %v4771_v11, %v3611_v12 }
  0x3e   :  { %1482 = vmatpush.bf16.msrb.mxu0 %v3674_v32  ;;  %v3914_v46 = vor.u32 %v4849_v41, %v3913_v40  ;;  %v3641_v47 = vld [vmem:[#allocation2 + $0x420] sm:$0xf]  ;;  %v4781_v48 = vld [vmem:[#allocation2 + $0x42c] sm:$0xf0]  ;;  %v4703_v26 = vld [vmem:[#allocation2 + $0x1c4] sm:$0xf]  ;;  %v5176_v37 = vpack.c.bf16 %v63_v22, %v63_v22 }
  0x3f   :  { %1495 = vmatpush.bf16.msrb.mxu1 %v3802_v33  ;;  %v3769_v49 = vld [vmem:[#allocation2 + $0x520] sm:$0xf]  ;;  %v4813_v51 = vld [vmem:[#allocation2 + $0x52c] sm:$0xf0]  ;;  %v3642_v56 = vor.u32 %v4781_v48, %v3641_v47  ;;  %v3339_v27 = vld [vmem:[#allocation2 + $0x1d0] sm:$0xf0] }
  0x40   :  { %1508 = vmatpush.bf16.msrb.mxu2 %v3930_v34  ;;  %v3897_v52 = vld [vmem:[#allocation2 + $0x620] sm:$0xf]  ;;  %v4845_v53 = vld [vmem:[#allocation2 + $0x62c] sm:$0xf0]  ;;  %v3770_v59 = vor.u32 %v4813_v51, %v3769_v49  ;;  %v4735_v28 = vld [vmem:[#allocation2 + $0x2c4] sm:$0xf] }
  0x41   :  { %1521 = vmatpush.bf16.msrb.mxu3 %v3166_v38  ;;  %v3625_v57 = vld [vmem:[#allocation2 + $0x400] sm:$0xf]  ;;  %v4777_v58 = vld [vmem:[#allocation2 + $0x40c] sm:$0xf0]  ;;  %v3898_v60 = vor.u32 %v4845_v53, %v3897_v52  ;;  %v3595_v32 = vld [vmem:[#allocation2 + $0x3d0] sm:$0xf0]  ;;  %v3342_v38 = vor.u32 %v4703_v26, %v3339_v27  ;;  %v3470_v39 = vor.u32 %v4735_v28, %v3467_v30 }
  0x42   :  { %1483 = vmatpush.bf16.msrb.mxu0 %v3658_v44  ;;  %v3753_v61 = vld [vmem:[#allocation2 + $0x500] sm:$0xf]  ;;  %v4809_v62 = vld [vmem:[#allocation2 + $0x50c] sm:$0xf0]  ;;  %v3626_v7 = vor.u32 %v4777_v58, %v3625_v57  ;;  %v4799_v34 = vld [vmem:[#allocation2 + $0x4c4] sm:$0xf]  ;;  %v3598_v40 = vor.u32 %v4767_v31, %v3595_v32 }
  0x43   :  { %1496 = vmatpush.bf16.msrb.mxu1 %v3786_v45  ;;  %v3881_v63 = vld [vmem:[#allocation2 + $0x600] sm:$0xf]  ;;  %v4841_v1 = vld [vmem:[#allocation2 + $0x60c] sm:$0xf0]  ;;  %v3754_v13 = vor.u32 %v4809_v62, %v3753_v61  ;;  %v3723_v35 = vld [vmem:[#allocation2 + $0x4d0] sm:$0xf0] }
  0x44   :  { %1509 = vmatpush.bf16.msrb.mxu2 %v3914_v46  ;;  %v3882_v14 = vor.u32 %v4841_v1, %v3881_v63  ;;  %v64_v18 = vld [vmem:[%s5414_s0 + $0x30] sm:$0xff]  ;;  %v62_v21 = vld [vmem:[%s5414_s0 + $0x20] sm:$0xff]  ;;  %v3726_v44 = vor.u32 %v4799_v34, %v3723_v35 }
  0x45   :  { %1522 = vmatpush.bf16.msrb.mxu3 %v3150_v50  ;;  %v5172_v33 = vpack.c.bf16 %v64_v18, %v64_v18  ;;  %v5174_v36 = vpack.c.bf16 %v62_v21, %v62_v21  ;;  %v4699_v41 = vld [vmem:[#allocation2 + $0x1a4] sm:$0xf]  ;;  %v3451_v45 = vld [vmem:[#allocation2 + $0x2b0] sm:$0xf0] }
  0x46   :  { %1484 = vmatpush.bf16.msrb.mxu0 %v3642_v56  ;;  %v4763_v46 = vld [vmem:[#allocation2 + $0x3a4] sm:$0xf]  ;;  %v3579_v47 = vld [vmem:[#allocation2 + $0x3b0] sm:$0xf0]  ;;  %v3326_v50 = vor.u32 %v4699_v41, %v3323_v42  ;;  %v3454_v51 = vor.u32 %v4731_v43, %v3451_v45 }
  0x47   :  { %1497 = vmatpush.bf16.msrb.mxu1 %v3770_v59  ;;  %v4795_v48 = vld [vmem:[#allocation2 + $0x4a4] sm:$0xf]  ;;  %v3707_v49 = vld [vmem:[#allocation2 + $0x4b0] sm:$0xf0]  ;;  %v3582_v52 = vor.u32 %v4763_v46, %v3579_v47 }
  0x48   :  { %1510 = vmatpush.bf16.msrb.mxu2 %v3898_v60  ;;  %v4695_v53 = vld [vmem:[#allocation2 + $0x184] sm:$0xf]  ;;  %v3307_v54 = vld [vmem:[#allocation2 + $0x190] sm:$0xf0]  ;;  %v3710_v56 = vor.u32 %v4795_v48, %v3707_v49 }
  0x49   :  { %1523 = vmatpush.bf16.msrb.mxu3 %v3134_v0  ;;  %v4727_v55 = vld [vmem:[#allocation2 + $0x284] sm:$0xf]  ;;  %v3435_v57 = vld [vmem:[#allocation2 + $0x290] sm:$0xf0]  ;;  %v3310_v62 = vor.u32 %v4695_v53, %v3307_v54 }
  0x4a   :  { %1485 = vmatpush.bf16.msrb.mxu0 %v3626_v7  ;;  %v4759_v58 = vld [vmem:[#allocation2 + $0x384] sm:$0xf]  ;;  %v3563_v59 = vld [vmem:[#allocation2 + $0x390] sm:$0xf0]  ;;  %v3438_v63 = vor.u32 %v4727_v55, %v3435_v57 }
  0x4b   :  { %1498 = vmatpush.bf16.msrb.mxu1 %v3754_v13  ;;  %v4791_v60 = vld [vmem:[#allocation2 + $0x484] sm:$0xf]  ;;  %v3691_v61 = vld [vmem:[#allocation2 + $0x490] sm:$0xf0]  ;;  %v3566_v0 = vor.u32 %v4759_v58, %v3563_v59  ;;  %v3233_v58 = vld [vmem:[#allocation2 + $0xe8] sm:$0xf] }
  0x4c   :  { %1511 = vmatpush.bf16.msrb.mxu2 %v3882_v14  ;;  %v4691_v1 = vld [vmem:[#allocation2 + $0x164] sm:$0xf]  ;;  %v3291_v2 = vld [vmem:[#allocation2 + $0x170] sm:$0xf0]  ;;  %v3694_v4 = vor.u32 %v4791_v60, %v3691_v61  ;;  %v4678_v59 = vld [vmem:[#allocation2 + $0xf4] sm:$0xf0] }
  0x4d   :  { %1524 = vmatpush.bf16.msrb.mxu3 %v3118_v19  ;;  %1486 = vmatmul.bf16.vlgmr.msrb.gmra.mxu0 %v5174_v36  ;;  %v4723_v3 = vld [vmem:[#allocation2 + $0x264] sm:$0xf]  ;;  %v3419_v5 = vld [vmem:[#allocation2 + $0x270] sm:$0xf0]  ;;  %v3294_v12 = vor.u32 %v4691_v1, %v3291_v2 }
  0x4e   :  { %1530 = vmatpush.bf16.msra.mxu0 %v3358_v20  ;;  %1499 = vmatmul.bf16.vlgmr.msrb.gmra.mxu1 %v5176_v37  ;;  %v4755_v6 = vld [vmem:[#allocation2 + $0x364] sm:$0xf]  ;;  %v3547_v7 = vld [vmem:[#allocation2 + $0x370] sm:$0xf0]  ;;  %v3422_v13 = vor.u32 %v4723_v3, %v3419_v5  ;;  %v3234_v3 = vor.u32 %v4678_v59, %v3233_v58 }
  0x4f   :  { %1543 = vmatpush.bf16.msra.mxu1 %v3486_v23  ;;  %1512 = vmatmul.bf16.vlgmr.msrb.gmra.mxu2 %v5172_v33  ;;  %v4787_v10 = vld [vmem:[#allocation2 + $0x464] sm:$0xf]  ;;  %v3675_v11 = vld [vmem:[#allocation2 + $0x470] sm:$0xf0]  ;;  %v3550_v14 = vor.u32 %v4755_v6, %v3547_v7 }
  0x50   :  { %1556 = vmatpush.bf16.msra.mxu2 %v3614_v24  ;;  %1525 = vmatmul.bf16.vlgmr.msrb.gmra.mxu3 %v5147_v9  ;;  %v4687_v16 = vld [vmem:[#allocation2 + $0x144] sm:$0xf]  ;;  %v3275_v17 = vld [vmem:[#allocation2 + $0x150] sm:$0xf0]  ;;  %v3678_v19 = vor.u32 %v4787_v10, %v3675_v11  ;;  %v3217_v11 = vld [vmem:[#allocation2 + $0xc8] sm:$0xf] }
  0x51   :  { %1569 = vmatpush.bf16.msra.mxu3 %v3742_v29  ;;  %v4719_v18 = vld [vmem:[#allocation2 + $0x244] sm:$0xf]  ;;  %v3403_v20 = vld [vmem:[#allocation2 + $0x250] sm:$0xf0]  ;;  %v3278_v26 = vor.u32 %v4687_v16, %v3275_v17 }
  0x52   :  { %1531 = vmatpush.bf16.msra.mxu0 %v3342_v38  ;;  %v4751_v21 = vld [vmem:[#allocation2 + $0x344] sm:$0xf]  ;;  %v3531_v22 = vld [vmem:[#allocation2 + $0x350] sm:$0xf0]  ;;  %v3406_v27 = vor.u32 %v4719_v18, %v3403_v20 }
  0x53   :  { %1544 = vmatpush.bf16.msra.mxu1 %v3470_v39  ;;  %v4783_v23 = vld [vmem:[#allocation2 + $0x444] sm:$0xf]  ;;  %v3659_v24 = vld [vmem:[#allocation2 + $0x450] sm:$0xf0]  ;;  %v3534_v28 = vor.u32 %v4751_v21, %v3531_v22 }
  0x54   :  { %1557 = vmatpush.bf16.msra.mxu2 %v3598_v40  ;;  %v4683_v29 = vld [vmem:[#allocation2 + $0x124] sm:$0xf]  ;;  %v3259_v30 = vld [vmem:[#allocation2 + $0x130] sm:$0xf0]  ;;  %v3662_v32 = vor.u32 %v4783_v23, %v3659_v24  ;;  %v3201_v24 = vld [vmem:[#allocation2 + $0xa8] sm:$0xf] }
  0x55   :  { %1570 = vmatpush.bf16.msra.mxu3 %v3726_v44  ;;  %v4715_v31 = vld [vmem:[#allocation2 + $0x224] sm:$0xf]  ;;  %v3387_v34 = vld [vmem:[#allocation2 + $0x230] sm:$0xf0]  ;;  %v3262_v41 = vor.u32 %v4683_v29, %v3259_v30 }
  0x56   :  { %1532 = vmatpush.bf16.msra.mxu0 %v3326_v50  ;;  %v4747_v35 = vld [vmem:[#allocation2 + $0x324] sm:$0xf]  ;;  %v3515_v38 = vld [vmem:[#allocation2 + $0x330] sm:$0xf0]  ;;  %v3390_v44 = vor.u32 %v4715_v31, %v3387_v34 }
  0x57   :  { %1545 = vmatpush.bf16.msra.mxu1 %v3454_v51  ;;  %v4779_v39 = vld [vmem:[#allocation2 + $0x424] sm:$0xf]  ;;  %v3643_v40 = vld [vmem:[#allocation2 + $0x430] sm:$0xf0]  ;;  %v3518_v45 = vor.u32 %v4747_v35, %v3515_v38 }
  0x58   :  { %1558 = vmatpush.bf16.msra.mxu2 %v3582_v52  ;;  %v4679_v42 = vld [vmem:[#allocation2 + $0x104] sm:$0xf]  ;;  %v3243_v43 = vld [vmem:[#allocation2 + $0x110] sm:$0xf0]  ;;  %v3646_v49 = vor.u32 %v4779_v39, %v3643_v40  ;;  %v3185_v40 = vld [vmem:[#allocation2 + $0x88] sm:$0xf] }
  0x59   :  { %1571 = vmatpush.bf16.msra.mxu3 %v3710_v56  ;;  %v4711_v46 = vld [vmem:[#allocation2 + $0x204] sm:$0xf]  ;;  %v3371_v47 = vld [vmem:[#allocation2 + $0x210] sm:$0xf0]  ;;  %v3246_v56 = vor.u32 %v4679_v42, %v3243_v43  ;;  %v3313_v42 = vld [vmem:[#allocation2 + $0x188] sm:$0xf] }
  0x5a   :  { %1533 = vmatpush.bf16.msra.mxu0 %v3310_v62  ;;  %v4743_v48 = vld [vmem:[#allocation2 + $0x304] sm:$0xf]  ;;  %v3499_v50 = vld [vmem:[#allocation2 + $0x310] sm:$0xf0]  ;;  %v3374_v60 = vor.u32 %v4711_v46, %v3371_v47  ;;  %v3361_v62 = vld [vmem:[#allocation2 + $0x1e8] sm:$0xf] }
  0x5b   :  { %1546 = vmatpush.bf16.msra.mxu1 %v3438_v63  ;;  %v4775_v51 = vld [vmem:[#allocation2 + $0x404] sm:$0xf]  ;;  %v3627_v52 = vld [vmem:[#allocation2 + $0x410] sm:$0xf0]  ;;  %v3502_v61 = vor.u32 %v4743_v48, %v3499_v50  ;;  %v4710_v63 = vld [vmem:[#allocation2 + $0x1f4] sm:$0xf0] }
  0x5c   :  { %1559 = vmatpush.bf16.msra.mxu2 %v3566_v0  ;;  %v4835_v53 = vld [vmem:[#allocation2 + $0x5e4] sm:$0xf]  ;;  %v3867_v54 = vld [vmem:[#allocation2 + $0x5f0] sm:$0xf0]  ;;  %v3630_v0 = vor.u32 %v4775_v51, %v3627_v52  ;;  %v3362_v7 = vor.u32 %v4710_v63, %v3361_v62  ;;  %v4698_v43 = vld [vmem:[#allocation2 + $0x194] sm:$0xf0] }
  0x5d   :  { %1572 = vmatpush.bf16.msra.mxu3 %v3694_v4  ;;  %v4867_v55 = vld [vmem:[#allocation2 + $0x6e4] sm:$0xf]  ;;  %v3995_v57 = vld [vmem:[#allocation2 + $0x6f0] sm:$0xf0]  ;;  %v3870_v1 = vor.u32 %v4835_v53, %v3867_v54  ;;  %v3314_v50 = vor.u32 %v4698_v43, %v3313_v42  ;;  %v3169_v52 = vld [vmem:[#allocation2 + $0x68] sm:$0xf] }
  0x5e   :  { %1534 = vmatpush.bf16.msra.mxu0 %v3294_v12  ;;  %v3998_v2 = vor.u32 %v4867_v55, %v3995_v57  ;;  %v4831_v4 = vld [vmem:[#allocation2 + $0x5c4] sm:$0xf]  ;;  %v3851_v5 = vld [vmem:[#allocation2 + $0x5d0] sm:$0xf0]  ;;  %v4674_v12 = vld [vmem:[#allocation2 + $0xd4] sm:$0xf0] }
  0x5f   :  { %1547 = vmatpush.bf16.msra.mxu1 %v3422_v13  ;;  %v4863_v6 = vld [vmem:[#allocation2 + $0x6c4] sm:$0xf]  ;;  %v3979_v10 = vld [vmem:[#allocation2 + $0x6d0] sm:$0xf0]  ;;  %v3345_v13 = vld [vmem:[#allocation2 + $0x1c8] sm:$0xf]  ;;  %v3854_v16 = vor.u32 %v4831_v4, %v3851_v5  ;;  %v3218_v18 = vor.u32 %v4674_v12, %v3217_v11 }
  0x60   :  { %1560 = vmatpush.bf16.msra.mxu2 %v3550_v14  ;;  %v4706_v14 = vld [vmem:[#allocation2 + $0x1d4] sm:$0xf0]  ;;  %v3982_v17 = vor.u32 %v4863_v6, %v3979_v10  ;;  %v3835_v20 = vld [vmem:[#allocation2 + $0x5b0] sm:$0xf0]  ;;  %v4859_v21 = vld [vmem:[#allocation2 + $0x6a4] sm:$0xf] }
  0x61   :  { %1573 = vmatpush.bf16.msra.mxu3 %v3678_v19  ;;  %v4827_v19 = vld [vmem:[#allocation2 + $0x5a4] sm:$0xf]  ;;  %v3346_v22 = vor.u32 %v4706_v14, %v3345_v13  ;;  %v3963_v23 = vld [vmem:[#allocation2 + $0x6b0] sm:$0xf0]  ;;  %v4662_v53 = vld [vmem:[#allocation2 + $0x74] sm:$0xf0] }
  0x62   :  { %1535 = vmatpush.bf16.msra.mxu0 %v3278_v26  ;;  %v4670_v26 = vld [vmem:[#allocation2 + $0xb4] sm:$0xf0]  ;;  %v3838_v29 = vor.u32 %v4827_v19, %v3835_v20  ;;  %v3966_v30 = vor.u32 %v4859_v21, %v3963_v23  ;;  %v3819_v34 = vld [vmem:[#allocation2 + $0x590] sm:$0xf0]  ;;  %v4855_v35 = vld [vmem:[#allocation2 + $0x684] sm:$0xf]  ;;  %v3170_v58 = vor.u32 %v4662_v53, %v3169_v52 }
  0x63   :  { %1548 = vmatpush.bf16.msra.mxu1 %v3406_v27  ;;  %v3329_v27 = vld [vmem:[#allocation2 + $0x1a8] sm:$0xf]  ;;  %v3202_v31 = vor.u32 %v4670_v26, %v3201_v24  ;;  %v3947_v39 = vld [vmem:[#allocation2 + $0x690] sm:$0xf0]  ;;  %v4819_v47 = vld [vmem:[#allocation2 + $0x564] sm:$0xf] }
  0x64   :  { %1561 = vmatpush.bf16.msra.mxu2 %v3534_v28  ;;  %v4702_v28 = vld [vmem:[#allocation2 + $0x1b4] sm:$0xf0]  ;;  %v3803_v48 = vld [vmem:[#allocation2 + $0x570] sm:$0xf0]  ;;  %v3297_v54 = vld [vmem:[#allocation2 + $0x168] sm:$0xf] }
  0x65   :  { %1574 = vmatpush.bf16.msra.mxu3 %v3662_v32  ;;  %v4823_v32 = vld [vmem:[#allocation2 + $0x584] sm:$0xf]  ;;  %v3330_v38 = vor.u32 %v4702_v28, %v3329_v27  ;;  %v3931_v51 = vld [vmem:[#allocation2 + $0x670] sm:$0xf0]  ;;  %v4694_v55 = vld [vmem:[#allocation2 + $0x174] sm:$0xf0] }
  0x66   :  { %1536 = vmatpush.bf16.msra.mxu0 %v3262_v41  ;;  %v4666_v41 = vld [vmem:[#allocation2 + $0x94] sm:$0xf0]  ;;  %v4815_v59 = vld [vmem:[#allocation2 + $0x544] sm:$0xf]  ;;  %v3298_v62 = vor.u32 %v4694_v55, %v3297_v54  ;;  %v3915_v63 = vld [vmem:[#allocation2 + $0x650] sm:$0xf0] }
  0x67   :  { %1549 = vmatpush.bf16.msra.mxu1 %v3390_v44  ;;  %v3822_v44 = vor.u32 %v4823_v32, %v3819_v34  ;;  %v3186_v46 = vor.u32 %v4666_v41, %v3185_v40  ;;  %v3771_v10 = vld [vmem:[#allocation2 + $0x530] sm:$0xf0]  ;;  %v4843_v11 = vld [vmem:[#allocation2 + $0x624] sm:$0xf]  ;;  %v3137_v14 = vld [vmem:[#allocation2 + $0x28] sm:$0xf] }
  0x68   :  { %1562 = vmatpush.bf16.msra.mxu2 %v3518_v45  ;;  %v3950_v45 = vor.u32 %v4855_v35, %v3947_v39  ;;  %v3899_v13 = vld [vmem:[#allocation2 + $0x630] sm:$0xf0]  ;;  %v4807_v20 = vld [vmem:[#allocation2 + $0x504] sm:$0xf]  ;;  %v3121_v27 = vld [vmem:[#allocation2 + $0x8] sm:$0xf] }
  0x69   :  { %1575 = vmatpush.bf16.msra.mxu3 %v3646_v49  ;;  %v4851_v49 = vld [vmem:[#allocation2 + $0x664] sm:$0xf]  ;;  %v3755_v21 = vld [vmem:[#allocation2 + $0x510] sm:$0xf0]  ;;  %v3489_v32 = vld [vmem:[#allocation2 + $0x2e8] sm:$0xf] }
  0x6a   :  { %1537 = vmatpush.bf16.msra.mxu0 %v3246_v56  ;;  %v3806_v56 = vor.u32 %v4819_v47, %v3803_v48  ;;  %v3934_v57 = vor.u32 %v4851_v49, %v3931_v51  ;;  %v4839_v24 = vld [vmem:[#allocation2 + $0x604] sm:$0xf]  ;;  %v3883_v26 = vld [vmem:[#allocation2 + $0x610] sm:$0xf0]  ;;  %v4742_v34 = vld [vmem:[#allocation2 + $0x2f4] sm:$0xf0] }
  0x6b   :  { %1550 = vmatpush.bf16.msra.mxu1 %v3374_v60  ;;  %v3787_v60 = vld [vmem:[#allocation2 + $0x550] sm:$0xf0]  ;;  %v3617_v35 = vld [vmem:[#allocation2 + $0x3e8] sm:$0xf]  ;;  %v4774_v39 = vld [vmem:[#allocation2 + $0x3f4] sm:$0xf0]  ;;  %v3886_v42 = vor.u32 %v4839_v24, %v3883_v26  ;;  %v3490_v47 = vor.u32 %v4742_v34, %v3489_v32 }
  0x6c   :  { %1563 = vmatpush.bf16.msra.mxu2 %v3502_v61  ;;  %v4847_v61 = vld [vmem:[#allocation2 + $0x644] sm:$0xf]  ;;  %v3790_v4 = vor.u32 %v4815_v59, %v3787_v60  ;;  %v3745_v40 = vld [vmem:[#allocation2 + $0x4e8] sm:$0xf]  ;;  %v4806_v41 = vld [vmem:[#allocation2 + $0x4f4] sm:$0xf0]  ;;  %v3618_v48 = vor.u32 %v4774_v39, %v3617_v35 }
  0x6d   :  { %1576 = vmatpush.bf16.msra.mxu3 %v3630_v0  ;;  %1538 = vmatmul.bf16.vlgmr.msra.gmra.mxu0 %v5160_v25  ;;  %v3153_v0 = vld [vmem:[#allocation2 + $0x48] sm:$0xf]  ;;  %v3918_v5 = vor.u32 %v4847_v61, %v3915_v63  ;;  %v3746_v49 = vor.u32 %v4806_v41, %v3745_v40  ;;  %v4738_v51 = vld [vmem:[#allocation2 + $0x2d4] sm:$0xf0] }
  0x6e   :  { %1582 = vmatpush.bf16.msrb.mxu0 %v3870_v1  ;;  %1551 = vmatmul.bf16.vlgmr.msra.gmra.mxu1 %v5145_v8  ;;  %v4658_v1 = vld [vmem:[#allocation2 + $0x54] sm:$0xf0]  ;;  %v3601_v52 = vld [vmem:[#allocation2 + $0x3c8] sm:$0xf] }
  0x6f   :  { %1595 = vmatpush.bf16.msrb.mxu1 %v3998_v2  ;;  %1564 = vmatmul.bf16.vlgmr.msra.gmra.mxu2 %v5152_v15  ;;  %v3281_v2 = vld [vmem:[#allocation2 + $0x148] sm:$0xf]  ;;  %v3154_v6 = vor.u32 %v4658_v1, %v3153_v0  ;;  %v4770_v54 = vld [vmem:[#allocation2 + $0x3d4] sm:$0xf0] }
  0x70   :  { %1608 = vmatpush.bf16.msrb.mxu2 %v3234_v3  ;;  %1577 = vmatmul.bf16.vlgmr.msra.gmra.mxu3 %v5174_v36  ;;  %v4690_v3 = vld [vmem:[#allocation2 + $0x154] sm:$0xf0]  ;;  %v3729_v55 = vld [vmem:[#allocation2 + $0x4c8] sm:$0xf]  ;;  %v3602_v60 = vor.u32 %v4770_v54, %v3601_v52 }
  0x71   :  { %1621 = vmatpush.bf16.msrb.mxu3 %v3362_v7  ;;  %v4811_v7 = vld [vmem:[#allocation2 + $0x524] sm:$0xf]  ;;  %v3282_v12 = vor.u32 %v4690_v3, %v3281_v2  ;;  %v4734_v63 = vld [vmem:[#allocation2 + $0x2b4] sm:$0xf0]  ;;  %v3585_v0 = vld [vmem:[#allocation2 + $0x3a8] sm:$0xf] }
  0x72   :  { %1583 = vmatpush.bf16.msrb.mxu0 %v3854_v16  ;;  %v4654_v16 = vld [vmem:[#allocation2 + $0x34] sm:$0xf0]  ;;  %v3774_v19 = vor.u32 %v4811_v7, %v3771_v10  ;;  %v3713_v3 = vld [vmem:[#allocation2 + $0x4a8] sm:$0xf] }
  0x73   :  { %1596 = vmatpush.bf16.msrb.mxu1 %v3982_v17  ;;  %v3265_v17 = vld [vmem:[#allocation2 + $0x128] sm:$0xf]  ;;  %v3138_v23 = vor.u32 %v4654_v16, %v3137_v14  ;;  %v4766_v2 = vld [vmem:[#allocation2 + $0x3b4] sm:$0xf0] }
  0x74   :  { %1609 = vmatpush.bf16.msrb.mxu2 %v3218_v18  ;;  %v4686_v18 = vld [vmem:[#allocation2 + $0x134] sm:$0xf0]  ;;  %v3586_v10 = vor.u32 %v4766_v2, %v3585_v0  ;;  %v3569_v14 = vld [vmem:[#allocation2 + $0x388] sm:$0xf] }
  0x75   :  { %1622 = vmatpush.bf16.msrb.mxu3 %v3346_v22  ;;  %v3902_v22 = vor.u32 %v4843_v11, %v3899_v13  ;;  %v3266_v28 = vor.u32 %v4686_v18, %v3265_v17  ;;  %v4730_v13 = vld [vmem:[#allocation2 + $0x294] sm:$0xf0]  ;;  %v3697_v18 = vld [vmem:[#allocation2 + $0x488] sm:$0xf] }
  0x76   :  { %1584 = vmatpush.bf16.msrb.mxu0 %v3838_v29  ;;  %v4650_v29 = vld [vmem:[#allocation2 + $0x14] sm:$0xf0]  ;;  %v3425_v26 = vld [vmem:[#allocation2 + $0x268] sm:$0xf] }
  0x77   :  { %1597 = vmatpush.bf16.msrb.mxu1 %v3966_v30  ;;  %v3249_v30 = vld [vmem:[#allocation2 + $0x108] sm:$0xf]  ;;  %v3122_v43 = vor.u32 %v4650_v29, %v3121_v27  ;;  %v4762_v17 = vld [vmem:[#allocation2 + $0x394] sm:$0xf0] }
  0x78   :  { %1610 = vmatpush.bf16.msrb.mxu2 %v3202_v31  ;;  %v4682_v31 = vld [vmem:[#allocation2 + $0x114] sm:$0xf0]  ;;  %v3809_v34 = vld [vmem:[#allocation2 + $0x568] sm:$0xf] }
  0x79   :  { %1623 = vmatpush.bf16.msrb.mxu3 %v3330_v38  ;;  %v3758_v38 = vor.u32 %v4807_v20, %v3755_v21  ;;  %v3825_v20 = vld [vmem:[#allocation2 + $0x588] sm:$0xf]  ;;  %v4826_v21 = vld [vmem:[#allocation2 + $0x594] sm:$0xf0] }
  0x7a   :  { %1585 = vmatpush.bf16.msrb.mxu0 %v3822_v44  ;;  %v3873_v44 = vld [vmem:[#allocation2 + $0x5e8] sm:$0xf]  ;;  %v4726_v27 = vld [vmem:[#allocation2 + $0x274] sm:$0xf0]  ;;  %v3826_v29 = vor.u32 %v4826_v21, %v3825_v20 }
  0x7b   :  { %1598 = vmatpush.bf16.msrb.mxu1 %v3950_v45  ;;  %v4838_v45 = vld [vmem:[#allocation2 + $0x5f4] sm:$0xf0]  ;;  %v3409_v41 = vld [vmem:[#allocation2 + $0x248] sm:$0xf] }
  0x7c   :  { %1611 = vmatpush.bf16.msrb.mxu2 %v3186_v46  ;;  %v3250_v46 = vor.u32 %v4682_v31, %v3249_v30  ;;  %v3874_v53 = vor.u32 %v4838_v45, %v3873_v44  ;;  %v4758_v30 = vld [vmem:[#allocation2 + $0x374] sm:$0xf0]  ;;  %v3681_v31 = vld [vmem:[#allocation2 + $0x468] sm:$0xf] }
  0x7d   :  { %1624 = vmatpush.bf16.msrb.mxu3 %v3314_v50  ;;  %v3473_v50 = vld [vmem:[#allocation2 + $0x2c8] sm:$0xf]  ;;  %v4790_v32 = vld [vmem:[#allocation2 + $0x474] sm:$0xf0] }
  0x7e   :  { %1586 = vmatpush.bf16.msrb.mxu0 %v3806_v56  ;;  %v4802_v56 = vld [vmem:[#allocation2 + $0x4d4] sm:$0xf0]  ;;  %v3474_v59 = vor.u32 %v4738_v51, %v3473_v50  ;;  %v3682_v40 = vor.u32 %v4790_v32, %v3681_v31  ;;  %v4672_v31 = vld [vmem:[#allocation2 + $0xcc] sm:$0xf] }
  0x7f   :  { %1599 = vmatpush.bf16.msrb.mxu1 %v3934_v57  ;;  %v3857_v57 = vld [vmem:[#allocation2 + $0x5c8] sm:$0xf]  ;;  %v3730_v61 = vor.u32 %v4802_v56, %v3729_v55  ;;  %v4822_v35 = vld [vmem:[#allocation2 + $0x574] sm:$0xf0] }
  0x80   :  { %1612 = vmatpush.bf16.msrb.mxu2 %v3170_v58  ;;  %v4834_v58 = vld [vmem:[#allocation2 + $0x5d4] sm:$0xf0]  ;;  %v3810_v44 = vor.u32 %v4822_v35, %v3809_v34  ;;  %v3521_v55 = vld [vmem:[#allocation2 + $0x328] sm:$0xf]  ;;  %v3219_v34 = vld [vmem:[#allocation2 + $0xd8] sm:$0xf0] }
  0x81   :  { %1625 = vmatpush.bf16.msrb.mxu3 %v3298_v62  ;;  %v3457_v62 = vld [vmem:[#allocation2 + $0x2a8] sm:$0xf]  ;;  %v3858_v1 = vor.u32 %v4834_v58, %v3857_v57  ;;  %v4754_v45 = vld [vmem:[#allocation2 + $0x354] sm:$0xf0]  ;;  %v4704_v35 = vld [vmem:[#allocation2 + $0x1cc] sm:$0xf] }
  0x82   :  { %1587 = vmatpush.bf16.msrb.mxu0 %v3790_v4  ;;  %v4798_v4 = vld [vmem:[#allocation2 + $0x4b4] sm:$0xf0]  ;;  %v3458_v7 = vor.u32 %v4734_v63, %v3457_v62  ;;  %v3649_v58 = vld [vmem:[#allocation2 + $0x428] sm:$0xf] }
  0x83   :  { %1600 = vmatpush.bf16.msrb.mxu1 %v3918_v5  ;;  %v3841_v5 = vld [vmem:[#allocation2 + $0x5a8] sm:$0xf]  ;;  %v3714_v11 = vor.u32 %v4798_v4, %v3713_v3  ;;  %v4718_v54 = vld [vmem:[#allocation2 + $0x234] sm:$0xf0] }
  0x84   :  { %1613 = vmatpush.bf16.msrb.mxu2 %v3154_v6  ;;  %v4830_v6 = vld [vmem:[#allocation2 + $0x5b4] sm:$0xf0]  ;;  %v3377_v63 = vld [vmem:[#allocation2 + $0x208] sm:$0xf] }
  0x85   :  { %1626 = vmatpush.bf16.msrb.mxu3 %v3282_v12  ;;  %v3441_v12 = vld [vmem:[#allocation2 + $0x288] sm:$0xf]  ;;  %v3842_v16 = vor.u32 %v4830_v6, %v3841_v5  ;;  %v4750_v57 = vld [vmem:[#allocation2 + $0x334] sm:$0xf0] }
  0x86   :  { %1588 = vmatpush.bf16.msrb.mxu0 %v3774_v19  ;;  %v4794_v19 = vld [vmem:[#allocation2 + $0x494] sm:$0xf0]  ;;  %v3505_v3 = vld [vmem:[#allocation2 + $0x308] sm:$0xf] }
  0x87   :  { %1601 = vmatpush.bf16.msrb.mxu1 %v3902_v22  ;;  %v3442_v22 = vor.u32 %v4730_v13, %v3441_v12  ;;  %v3698_v24 = vor.u32 %v4794_v19, %v3697_v18  ;;  %v4714_v0 = vld [vmem:[#allocation2 + $0x214] sm:$0xf0]  ;;  %v3633_v5 = vld [vmem:[#allocation2 + $0x408] sm:$0xf]  ;;  %v4708_v18 = vld [vmem:[#allocation2 + $0x1ec] sm:$0xf] }
  0x88   :  { %1614 = vmatpush.bf16.msrb.mxu2 %v3138_v23  ;;  %v3570_v23 = vor.u32 %v4762_v17, %v3569_v14  ;;  %v4746_v4 = vld [vmem:[#allocation2 + $0x314] sm:$0xf0]  ;;  %v4001_v12 = vld [vmem:[#allocation2 + $0x6e8] sm:$0xf]  ;;  %v4676_v14 = vld [vmem:[#allocation2 + $0xec] sm:$0xf] }
  0x89   :  { %1627 = vmatpush.bf16.msrb.mxu3 %v3266_v28  ;;  %v3553_v28 = vld [vmem:[#allocation2 + $0x368] sm:$0xf]  ;;  %v4870_v13 = vld [vmem:[#allocation2 + $0x6f4] sm:$0xf0]  ;;  %v3235_v17 = vld [vmem:[#allocation2 + $0xf8] sm:$0xf0]  ;;  %v3506_v20 = vor.u32 %v4746_v4, %v3505_v3 }
  0x8a   :  { %1589 = vmatpush.bf16.msrb.mxu0 %v3758_v38  ;;  %v3426_v38 = vor.u32 %v4726_v27, %v3425_v26  ;;  %v3554_v39 = vor.u32 %v4758_v30, %v3553_v28  ;;  %v3363_v19 = vld [vmem:[#allocation2 + $0x1f8] sm:$0xf0]  ;;  %v4002_v26 = vor.u32 %v4870_v13, %v4001_v12  ;;  %v3238_v27 = vor.u32 %v4676_v14, %v3235_v17  ;;  %v4866_v30 = vld [vmem:[#allocation2 + $0x6d4] sm:$0xf0]  ;;  %v3937_v4 = vld [vmem:[#allocation2 + $0x668] sm:$0xf] }
  0x8b   :  { %1602 = vmatpush.bf16.msrb.mxu1 %v3886_v42  ;;  %v4722_v42 = vld [vmem:[#allocation2 + $0x254] sm:$0xf0]  ;;  %v3366_v28 = vor.u32 %v4708_v18, %v3363_v19  ;;  %v3299_v12 = vld [vmem:[#allocation2 + $0x178] sm:$0xf0]  ;;  %v4724_v13 = vld [vmem:[#allocation2 + $0x26c] sm:$0xf] }
  0x8c   :  { %1615 = vmatpush.bf16.msrb.mxu2 %v3122_v43  ;;  %v3537_v43 = vld [vmem:[#allocation2 + $0x348] sm:$0xf]  ;;  %v3410_v50 = vor.u32 %v4722_v42, %v3409_v41  ;;  %v3222_v42 = vor.u32 %v4672_v31, %v3219_v34  ;;  %v3427_v14 = vld [vmem:[#allocation2 + $0x278] sm:$0xf0] }
  0x8d   :  { %1628 = vmatpush.bf16.msrb.mxu3 %v3250_v46  ;;  %1590 = vmatmul.bf16.vlgmr.msrb.gmra.mxu0 %v5176_v37  ;;  %v3665_v46 = vld [vmem:[#allocation2 + $0x448] sm:$0xf]  ;;  %v3538_v51 = vor.u32 %v4754_v45, %v3537_v43  ;;  %v4862_v45 = vld [vmem:[#allocation2 + $0x6b4] sm:$0xf0] }
  0x8e   :  { %1634 = vmatpush.bf16.msra.mxu0 %v3490_v47  ;;  %1603 = vmatmul.bf16.vlgmr.msrb.gmra.mxu1 %v5172_v33  ;;  %v4786_v47 = vld [vmem:[#allocation2 + $0x454] sm:$0xf0] }
  0x8f   :  { %1647 = vmatpush.bf16.msra.mxu1 %v3618_v48  ;;  %1616 = vmatmul.bf16.vlgmr.msrb.gmra.mxu2 %v5147_v9  ;;  %v3793_v48 = vld [vmem:[#allocation2 + $0x548] sm:$0xf]  ;;  %v3666_v52 = vor.u32 %v4786_v47, %v3665_v46  ;;  %v4668_v46 = vld [vmem:[#allocation2 + $0xac] sm:$0xf] }
  0x90   :  { %1660 = vmatpush.bf16.msra.mxu2 %v3746_v49  ;;  %1629 = vmatmul.bf16.vlgmr.msrb.gmra.mxu3 %v5160_v25  ;;  %v4818_v49 = vld [vmem:[#allocation2 + $0x554] sm:$0xf0] }
  0x91   :  { %1673 = vmatpush.bf16.msra.mxu3 %v3874_v53  ;;  %v3393_v53 = vld [vmem:[#allocation2 + $0x228] sm:$0xf]  ;;  %v3794_v56 = vor.u32 %v4818_v49, %v3793_v48  ;;  %v3203_v48 = vld [vmem:[#allocation2 + $0xb8] sm:$0xf0]  ;;  %v4700_v49 = vld [vmem:[#allocation2 + $0x1ac] sm:$0xf] }
  0x92   :  { %1635 = vmatpush.bf16.msra.mxu0 %v3474_v59  ;;  %v4782_v59 = vld [vmem:[#allocation2 + $0x434] sm:$0xf0]  ;;  %v3394_v62 = vor.u32 %v4718_v54, %v3393_v53  ;;  %v3206_v54 = vor.u32 %v4668_v46, %v3203_v48  ;;  %v3395_v46 = vld [vmem:[#allocation2 + $0x238] sm:$0xf0] }
  0x93   :  { %1648 = vmatpush.bf16.msra.mxu1 %v3602_v60  ;;  %v3777_v60 = vld [vmem:[#allocation2 + $0x528] sm:$0xf]  ;;  %v3650_v2 = vor.u32 %v4782_v59, %v3649_v58  ;;  %v4664_v58 = vld [vmem:[#allocation2 + $0x8c] sm:$0xf] }
  0x94   :  { %1661 = vmatpush.bf16.msra.mxu2 %v3730_v61  ;;  %v4814_v61 = vld [vmem:[#allocation2 + $0x534] sm:$0xf0] }
  0x95   :  { %1674 = vmatpush.bf16.msra.mxu3 %v3858_v1  ;;  %v3522_v1 = vor.u32 %v4750_v57, %v3521_v55  ;;  %v3778_v6 = vor.u32 %v4814_v61, %v3777_v60  ;;  %v4858_v57 = vld [vmem:[#allocation2 + $0x694] sm:$0xf0]  ;;  %v3187_v60 = vld [vmem:[#allocation2 + $0x98] sm:$0xf0]  ;;  %v4696_v61 = vld [vmem:[#allocation2 + $0x18c] sm:$0xf] }
  0x96   :  { %1636 = vmatpush.bf16.msra.mxu0 %v3458_v7  ;;  %v4778_v7 = vld [vmem:[#allocation2 + $0x414] sm:$0xf0] }
  0x97   :  { %1649 = vmatpush.bf16.msra.mxu1 %v3586_v10  ;;  %v3761_v10 = vld [vmem:[#allocation2 + $0x508] sm:$0xf]  ;;  %v3634_v21 = vor.u32 %v4778_v7, %v3633_v5  ;;  %v4854_v5 = vld [vmem:[#allocation2 + $0x674] sm:$0xf0] }
  0x98   :  { %1662 = vmatpush.bf16.msra.mxu2 %v3714_v11  ;;  %v4810_v11 = vld [vmem:[#allocation2 + $0x514] sm:$0xf0] }
  0x99   :  { %1675 = vmatpush.bf16.msra.mxu3 %v3842_v16  ;;  %v3378_v16 = vor.u32 %v4714_v0, %v3377_v63  ;;  %v4728_v63 = vld [vmem:[#allocation2 + $0x28c] sm:$0xf]  ;;  %v3443_v0 = vld [vmem:[#allocation2 + $0x298] sm:$0xf0] }
  0x9a   :  { %1637 = vmatpush.bf16.msra.mxu0 %v3442_v22  ;;  %v4740_v22 = vld [vmem:[#allocation2 + $0x2ec] sm:$0xf]  ;;  %v3446_v7 = vor.u32 %v4728_v63, %v3443_v0 }
  0x9b   :  { %1650 = vmatpush.bf16.msra.mxu1 %v3570_v23  ;;  %v3491_v23 = vld [vmem:[#allocation2 + $0x2f8] sm:$0xf0]  ;;  %v4804_v63 = vld [vmem:[#allocation2 + $0x4ec] sm:$0xf] }
  0x9c   :  { %1663 = vmatpush.bf16.msra.mxu2 %v3698_v24  ;;  %v3762_v24 = vor.u32 %v4810_v11, %v3761_v10  ;;  %v3494_v32 = vor.u32 %v4740_v22, %v3491_v23  ;;  %v3171_v10 = vld [vmem:[#allocation2 + $0x78] sm:$0xf0]  ;;  %v4692_v11 = vld [vmem:[#allocation2 + $0x16c] sm:$0xf]  ;;  %v3430_v23 = vor.u32 %v4724_v13, %v3427_v14 }
  0x9d   :  { %1676 = vmatpush.bf16.msra.mxu3 %v3826_v29  ;;  %v3985_v29 = vld [vmem:[#allocation2 + $0x6c8] sm:$0xf]  ;;  %v3302_v19 = vor.u32 %v4692_v11, %v3299_v12  ;;  %v4656_v22 = vld [vmem:[#allocation2 + $0x4c] sm:$0xf] }
  0x9e   :  { %1638 = vmatpush.bf16.msra.mxu0 %v3426_v38  ;;  %v3347_v38 = vld [vmem:[#allocation2 + $0x1d8] sm:$0xf0]  ;;  %v3986_v41 = vor.u32 %v4866_v30, %v3985_v29 }
  0x9f   :  { %1651 = vmatpush.bf16.msra.mxu1 %v3554_v39  ;;  %v4736_v39 = vld [vmem:[#allocation2 + $0x2cc] sm:$0xf]  ;;  %v3350_v43 = vor.u32 %v4704_v35, %v3347_v38  ;;  %v3411_v29 = vld [vmem:[#allocation2 + $0x258] sm:$0xf0]  ;;  %v3905_v35 = vld [vmem:[#allocation2 + $0x628] sm:$0xf] }
  0xa0   :  { %1664 = vmatpush.bf16.msra.mxu2 %v3682_v40  ;;  %v3475_v40 = vld [vmem:[#allocation2 + $0x2d8] sm:$0xf0]  ;;  %v4846_v38 = vld [vmem:[#allocation2 + $0x634] sm:$0xf0] }
  0xa1   :  { %1677 = vmatpush.bf16.msra.mxu3 %v3810_v44  ;;  %v3969_v44 = vld [vmem:[#allocation2 + $0x6a8] sm:$0xf]  ;;  %v3478_v47 = vor.u32 %v4736_v39, %v3475_v40  ;;  %v4652_v39 = vld [vmem:[#allocation2 + $0x2c] sm:$0xf]  ;;  %v3906_v48 = vor.u32 %v4846_v38, %v3905_v35  ;;  %v3587_v35 = vld [vmem:[#allocation2 + $0x3b8] sm:$0xf0] }
  0xa2   :  { %1639 = vmatpush.bf16.msra.mxu0 %v3410_v50  ;;  %v3331_v50 = vld [vmem:[#allocation2 + $0x1b8] sm:$0xf0]  ;;  %v3970_v53 = vor.u32 %v4862_v45, %v3969_v44  ;;  %v4716_v45 = vld [vmem:[#allocation2 + $0x22c] sm:$0xf] }
  0xa3   :  { %1652 = vmatpush.bf16.msra.mxu1 %v3538_v51  ;;  %v4732_v51 = vld [vmem:[#allocation2 + $0x2ac] sm:$0xf]  ;;  %v3334_v55 = vor.u32 %v4700_v49, %v3331_v50  ;;  %v3889_v49 = vld [vmem:[#allocation2 + $0x608] sm:$0xf]  ;;  %v4842_v50 = vld [vmem:[#allocation2 + $0x614] sm:$0xf0] }
  0xa4   :  { %1665 = vmatpush.bf16.msra.mxu2 %v3666_v52  ;;  %v3459_v52 = vld [vmem:[#allocation2 + $0x2b8] sm:$0xf0]  ;;  %v3890_v0 = vor.u32 %v4842_v50, %v3889_v49  ;;  %v4796_v38 = vld [vmem:[#allocation2 + $0x4ac] sm:$0xf] }
  0xa5   :  { %1678 = vmatpush.bf16.msra.mxu3 %v3794_v56  ;;  %v3953_v56 = vld [vmem:[#allocation2 + $0x688] sm:$0xf]  ;;  %v3462_v59 = vor.u32 %v4732_v51, %v3459_v52  ;;  %v4760_v50 = vld [vmem:[#allocation2 + $0x38c] sm:$0xf] }
  0xa6   :  { %1640 = vmatpush.bf16.msra.mxu0 %v3394_v62  ;;  %v3315_v62 = vld [vmem:[#allocation2 + $0x198] sm:$0xf0] }
  0xa7   :  { %1653 = vmatpush.bf16.msra.mxu1 %v3522_v1  ;;  %v3954_v1 = vor.u32 %v4858_v57, %v3953_v56  ;;  %v3318_v3 = vor.u32 %v4696_v61, %v3315_v62  ;;  %v4680_v56 = vld [vmem:[#allocation2 + $0x10c] sm:$0xf]  ;;  %v3398_v57 = vor.u32 %v4716_v45, %v3395_v46  ;;  %v3619_v62 = vld [vmem:[#allocation2 + $0x3f8] sm:$0xf0] }
  0xa8   :  { %1666 = vmatpush.bf16.msra.mxu2 %v3650_v2  ;;  %v3190_v2 = vor.u32 %v4664_v58, %v3187_v60  ;;  %v3251_v58 = vld [vmem:[#allocation2 + $0x118] sm:$0xf0]  ;;  %v4772_v61 = vld [vmem:[#allocation2 + $0x3ec] sm:$0xf] }
  0xa9   :  { %1679 = vmatpush.bf16.msra.mxu3 %v3778_v6  ;;  %v4660_v6 = vld [vmem:[#allocation2 + $0x6c] sm:$0xf]  ;;  %v3379_v60 = vld [vmem:[#allocation2 + $0x218] sm:$0xf0]  ;;  %v3622_v12 = vor.u32 %v4772_v61, %v3619_v62 }
  0xaa   :  { %1641 = vmatpush.bf16.msra.mxu0 %v3378_v16  ;;  %v3938_v16 = vor.u32 %v4854_v5, %v3937_v4  ;;  %v3174_v18 = vor.u32 %v4660_v6, %v3171_v10  ;;  %v3254_v6 = vor.u32 %v4680_v56, %v3251_v58  ;;  %v4003_v10 = vld [vmem:[#allocation2 + $0x6f8] sm:$0xf0]  ;;  %v4856_v56 = vld [vmem:[#allocation2 + $0x68c] sm:$0xf] }
  0xab   :  { %1654 = vmatpush.bf16.msra.mxu1 %v3506_v20  ;;  %v3921_v20 = vld [vmem:[#allocation2 + $0x648] sm:$0xf]  ;;  %v5196_v31 = vpop.f32.mrf.mxu1  ;;  %v3971_v45 = vld [vmem:[#allocation2 + $0x6b8] sm:$0xf0]  ;;  %v4756_v61 = vld [vmem:[#allocation2 + $0x36c] sm:$0xf] }
  0xac   :  { %1667 = vmatpush.bf16.msra.mxu2 %v3634_v21  ;;  %v4850_v21 = vld [vmem:[#allocation2 + $0x654] sm:$0xf0]  ;;  %v3555_v62 = vld [vmem:[#allocation2 + $0x378] sm:$0xf0] }
  0xad   :  { %1680 = vmatpush.bf16.msra.mxu3 %v3762_v24  ;;  %1642 = vmatmul.bf16.vlgmr.msra.gmra.mxu0 %v5145_v8  ;;  %v3155_v24 = vld [vmem:[#allocation2 + $0x58] sm:$0xf0]  ;;  %v3922_v30 = vor.u32 %v4850_v21, %v3921_v20  ;;  %v4800_v20 = vld [vmem:[#allocation2 + $0x4cc] sm:$0xf] }
  0xae   :  { %1686 = vmatpush.bf16.msrb.mxu0 %v4002_v26  ;;  %1655 = vmatmul.bf16.vlgmr.msra.gmra.mxu1 %v5152_v15  ;;  %v4688_v26 = vld [vmem:[#allocation2 + $0x14c] sm:$0xf] }
  0xaf   :  { %1699 = vmatpush.bf16.msrb.mxu1 %v3238_v27  ;;  %1668 = vmatmul.bf16.vlgmr.msra.gmra.mxu2 %v5174_v36  ;;  %v3283_v27 = vld [vmem:[#allocation2 + $0x158] sm:$0xf0] }
  0xb0   :  { %1712 = vmatpush.bf16.msrb.mxu2 %v3366_v28  ;;  %1681 = vmatmul.bf16.vlgmr.msra.gmra.mxu3 %v5176_v37  ;;  %v4720_v28 = vld [vmem:[#allocation2 + $0x24c] sm:$0xf]  ;;  %v3286_v34 = vor.u32 %v4688_v26, %v3283_v27  ;;  %v3859_v26 = vld [vmem:[#allocation2 + $0x5d8] sm:$0xf0] }
  0xb1   :  { %1725 = vmatpush.bf16.msrb.mxu3 %v3494_v32  ;;  %v3158_v32 = vor.u32 %v4656_v22, %v3155_v24  ;;  %v3414_v40 = vor.u32 %v4720_v28, %v3411_v29  ;;  %v4832_v24 = vld [vmem:[#allocation2 + $0x5cc] sm:$0xf]  ;;  %v3987_v28 = vld [vmem:[#allocation2 + $0x6d8] sm:$0xf0] }
  0xb2   :  { %1687 = vmatpush.bf16.msrb.mxu0 %v3986_v41  ;;  %v3139_v41 = vld [vmem:[#allocation2 + $0x38] sm:$0xf0]  ;;  %v4864_v27 = vld [vmem:[#allocation2 + $0x6cc] sm:$0xf] }
  0xb3   :  { %1700 = vmatpush.bf16.msrb.mxu1 %v3222_v42  ;;  %v4684_v42 = vld [vmem:[#allocation2 + $0x12c] sm:$0xf]  ;;  %v3142_v52 = vor.u32 %v4652_v39, %v3139_v41  ;;  %v1450_v4 = vpop.f32.mrf.mxu1  ;;  %v3990_v39 = vor.u32 %v4864_v27, %v3987_v28 }
  0xb4   :  { %1713 = vmatpush.bf16.msrb.mxu2 %v3350_v43  ;;  %v3267_v43 = vld [vmem:[#allocation2 + $0x138] sm:$0xf0]  ;;  %v4828_v41 = vld [vmem:[#allocation2 + $0x5ac] sm:$0xf] }
  0xb5   :  { %1726 = vmatpush.bf16.msrb.mxu3 %v3478_v47  ;;  %v5194_v17 = vpop.f32.mrf.mxu0  ;;  %v5200_v47 = vpop.f32.mrf.mxu3  ;;  %v4852_v4 = vld [vmem:[#allocation2 + $0x66c] sm:$0xf] }
  0xb6   :  { %1688 = vmatpush.bf16.msrb.mxu0 %v3970_v53  ;;  %v3270_v53 = vor.u32 %v4684_v42, %v3267_v43  ;;  %v3843_v42 = vld [vmem:[#allocation2 + $0x5b8] sm:$0xf0]  ;;  %v4860_v43 = vld [vmem:[#allocation2 + $0x6ac] sm:$0xf] }
  0xb7   :  { %1701 = vmatpush.bf16.msrb.mxu1 %v3206_v54  ;;  %v4648_v54 = vld [vmem:[#allocation2 + $0xc] sm:$0xf]  ;;  %v3846_v49 = vor.u32 %v4828_v41, %v3843_v42  ;;  %v3779_v41 = vld [vmem:[#allocation2 + $0x538] sm:$0xf0] }
  0xb8   :  { %1714 = vmatpush.bf16.msrb.mxu2 %v3334_v55  ;;  %v3123_v55 = vld [vmem:[#allocation2 + $0x18] sm:$0xf0]  ;;  %v4844_v42 = vld [vmem:[#allocation2 + $0x62c] sm:$0xf] }
  0xb9   :  { %1727 = vmatpush.bf16.msrb.mxu3 %v3462_v59  ;;  %v4712_v59 = vld [vmem:[#allocation2 + $0x20c] sm:$0xf]  ;;  %v3126_v5 = vor.u32 %v4648_v54, %v3123_v55  ;;  %v3699_v54 = vld [vmem:[#allocation2 + $0x498] sm:$0xf0] }
  0xba   :  { %1689 = vmatpush.bf16.msrb.mxu0 %v3954_v1  ;;  %v5198_v44 = vpop.f32.mrf.mxu2  ;;  %v3747_v1 = vld [vmem:[#allocation2 + $0x4f8] sm:$0xf0]  ;;  %v3382_v11 = vor.u32 %v4712_v59, %v3379_v60  ;;  %v4824_v55 = vld [vmem:[#allocation2 + $0x58c] sm:$0xf] }
  0xbb   :  { %1702 = vmatpush.bf16.msrb.mxu1 %v3190_v2  ;;  %v4836_v2 = vld [vmem:[#allocation2 + $0x5ec] sm:$0xf]  ;;  %v3750_v14 = vor.u32 %v4804_v63, %v3747_v1  ;;  %v3683_v1 = vld [vmem:[#allocation2 + $0x478] sm:$0xf0] }
  0xbc   :  { %1715 = vmatpush.bf16.msrb.mxu2 %v3318_v3  ;;  %v3875_v3 = vld [vmem:[#allocation2 + $0x5f8] sm:$0xf0]  ;;  %v4788_v63 = vld [vmem:[#allocation2 + $0x46c] sm:$0xf] }
  0xbd   :  { %1728 = vmatpush.bf16.msrb.mxu3 %v3446_v7  ;;  %v1437_v51 = vpop.f32.mrf.mxu0  ;;  %v4868_v7 = vld [vmem:[#allocation2 + $0x6ec] sm:$0xf]  ;;  %v1476_v21 = vpop.f32.mrf.mxu3 }
  0xbe   :  { %1690 = vmatpush.bf16.msrb.mxu0 %v3938_v16  ;;  %v3878_v16 = vor.u32 %v4836_v2, %v3875_v3  ;;  %v4006_v22 = vor.u32 %v4868_v7, %v4003_v10  ;;  %v3571_v51 = vld [vmem:[#allocation2 + $0x398] sm:$0xf0]  ;;  %v4820_v2 = vld [vmem:[#allocation2 + $0x56c] sm:$0xf]  ;;  %v3686_v7 = vor.u32 %v4788_v63, %v3683_v1  ;;  %v4249_v63 = vld [vmem:[#allocation4 + $0x1e0] sm:$0xf] }
  0xbf   :  { %1703 = vmatpush.bf16.msrb.mxu1 %v3174_v18  ;;  %v4768_v18 = vld [vmem:[#allocation2 + $0x3cc] sm:$0xf]  ;;  %v3811_v3 = vld [vmem:[#allocation2 + $0x578] sm:$0xf0] }
  0xc0   :  { %1716 = vmatpush.bf16.msrb.mxu2 %v3302_v19  ;;  %v3603_v19 = vld [vmem:[#allocation2 + $0x3d8] sm:$0xf0]  ;;  %v3814_v10 = vor.u32 %v4820_v2, %v3811_v3  ;;  %v4848_v21 = vld [vmem:[#allocation2 + $0x64c] sm:$0xf] }
  0xc1   :  { %1729 = vmatpush.bf16.msrb.mxu3 %v3430_v23  ;;  %v3731_v23 = vld [vmem:[#allocation2 + $0x4d8] sm:$0xf0]  ;;  %v3606_v29 = vor.u32 %v4768_v18, %v3603_v19  ;;  %v4816_v19 = vld [vmem:[#allocation2 + $0x54c] sm:$0xf] }
  0xc2   :  { %1691 = vmatpush.bf16.msrb.mxu0 %v3922_v30  ;;  %v1463_v13 = vpop.f32.mrf.mxu2  ;;  %v3734_v30 = vor.u32 %v4800_v20, %v3731_v23  ;;  %v3667_v18 = vld [vmem:[#allocation2 + $0x458] sm:$0xf0] }
  0xc3   :  { %1704 = vmatpush.bf16.msrb.mxu1 %v3158_v32  ;;  %v3862_v32 = vor.u32 %v4832_v24, %v3859_v26  ;;  %v4784_v13 = vld [vmem:[#allocation2 + $0x44c] sm:$0xf]  ;;  %v3795_v20 = vld [vmem:[#allocation2 + $0x558] sm:$0xf0]  ;;  %v5217_v24 = vld [vmem:[%s5416_s2] sm:$0xf] }
  0xc4   :  { %1717 = vmatpush.bf16.msrb.mxu2 %v3286_v34  ;;  %v4764_v34 = vld [vmem:[#allocation2 + $0x3ac] sm:$0xf] }
  0xc5   :  { %1730 = vmatpush.bf16.msrb.mxu3 %v3414_v40  ;;  %v3715_v40 = vld [vmem:[#allocation2 + $0x4b8] sm:$0xf0]  ;;  %v3590_v46 = vor.u32 %v4764_v34, %v3587_v35  ;;  %v4780_v35 = vld [vmem:[#allocation2 + $0x42c] sm:$0xf] }
  0xc6   :  { %1692 = vmatpush.bf16.msrb.mxu0 %v3906_v48  ;;  %v3718_v48 = vor.u32 %v4796_v38, %v3715_v40  ;;  %v3523_v34 = vld [vmem:[#allocation2 + $0x338] sm:$0xf0]  ;;  %v4812_v40 = vld [vmem:[#allocation2 + $0x52c] sm:$0xf] }
  0xc7   :  { %1705 = vmatpush.bf16.msrb.mxu1 %v3142_v52  ;;  %v4792_v52 = vld [vmem:[#allocation2 + $0x48c] sm:$0xf] }
  0xc8   :  { %1718 = vmatpush.bf16.msrb.mxu2 %v3270_v53  ;;  %v3974_v53 = vor.u32 %v4860_v43, %v3971_v45  ;;  %v3907_v43 = vld [vmem:[#allocation2 + $0x638] sm:$0xf0]  ;;  %v298_v45 = vperm.slane %v5217_v24, 0 }
  0xc9   :  { %1731 = vmatpush.bf16.msrb.mxu3 %v3398_v57  ;;  %v3955_v57 = vld [vmem:[#allocation2 + $0x698] sm:$0xf0] }
  0xca   :  { %1693 = vmatpush.bf16.msrb.mxu0 %v3890_v0  ;;  %v5206_v58 = vpop.f32.mrf.mxu0  ;;  %v3958_v0 = vor.u32 %v4856_v56, %v3955_v57  ;;  %v3763_v56 = vld [vmem:[#allocation2 + $0x518] sm:$0xf0]  ;;  %v4840_v57 = vld [vmem:[#allocation2 + $0x60c] sm:$0xf] }
  0xcb   :  { %1706 = vmatpush.bf16.msrb.mxu1 %v3126_v5  ;;  %v5208_v59 = vpop.f32.mrf.mxu1  ;;  %v3939_v5 = vld [vmem:[#allocation2 + $0x678] sm:$0xf0] }
  0xcc   :  { %1719 = vmatpush.bf16.msrb.mxu2 %v3254_v6  ;;  %v3558_v6 = vor.u32 %v4756_v61, %v3555_v62 }
  0xcd   :  { %1732 = vmatpush.bf16.msrb.mxu3 %v3382_v11  ;;  %1694 = vmatmul.bf16.vlgmr.msrb.gmra.mxu0 %v5172_v33  ;;  %v4752_v11 = vld [vmem:[#allocation2 + $0x34c] sm:$0xf] }
  0xce   :  { %1738 = vmatpush.bf16.msra.mxu0 %v3622_v12  ;;  %1707 = vmatmul.bf16.vlgmr.msrb.gmra.mxu1 %v5147_v9  ;;  %v3702_v9 = vor.u32 %v4792_v52, %v3699_v54  ;;  %v3539_v12 = vld [vmem:[#allocation2 + $0x358] sm:$0xf0]  ;;  %v4776_v52 = vld [vmem:[#allocation2 + $0x40c] sm:$0xf] }
  0xcf   :  { %1751 = vmatpush.bf16.msra.mxu1 %v3750_v14  ;;  %1720 = vmatmul.bf16.vlgmr.msrb.gmra.mxu2 %v5160_v25  ;;  %v3827_v25 = vld [vmem:[#allocation2 + $0x598] sm:$0xf0]  ;;  %v3542_v26 = vor.u32 %v4752_v11, %v3539_v12  ;;  %v4233_v11 = vld [vmem:[#allocation4 + $0x1c0] sm:$0xf]  ;;  %v4929_v12 = vld [vmem:[#allocation4 + $0x1cc] sm:$0xf0] }
  0xd0   :  { %1764 = vmatpush.bf16.msra.mxu2 %v3878_v16  ;;  %1733 = vmatmul.bf16.vlgmr.msrb.gmra.mxu3 %v5145_v8  ;;  %v3574_v8 = vor.u32 %v4760_v50, %v3571_v51  ;;  %v3830_v60 = vor.u32 %v4824_v55, %v3827_v25  ;;  %v3942_v16 = vor.u32 %v4852_v4, %v3939_v5  ;;  %v3507_v51 = vld [vmem:[#allocation2 + $0x318] sm:$0xf0]  ;;  %v4808_v25 = vld [vmem:[#allocation2 + $0x50c] sm:$0xf] }
  0xd1   :  { %1777 = vmatpush.bf16.msra.mxu3 %v4006_v22  ;;  %v3923_v22 = vld [vmem:[#allocation2 + $0x658] sm:$0xf0]  ;;  %v3782_v50 = vor.u32 %v4812_v40, %v3779_v41  ;;  %v3910_v55 = vor.u32 %v4844_v42, %v3907_v43  ;;  %v3766_v2 = vor.u32 %v4808_v25, %v3763_v56  ;;  %v1436_v5 = vadd.f32 %v5194_v17, %v298_v45  ;;  %v4217_v17 = vld [vmem:[#allocation4 + $0x1a0] sm:$0xf]  ;;  %v4881_v43 = vld [vmem:[#allocation4 + $0x4c] sm:$0xf0] }
  0xd2   :  { %1739 = vmatpush.bf16.msra.mxu0 %v3606_v29  ;;  %v5210_v14 = vpop.f32.mrf.mxu2  ;;  %v1489_v27 = vpop.f32.mrf.mxu0  ;;  %v3670_v29 = vor.u32 %v4784_v13, %v3667_v18  ;;  %v3926_v38 = vor.u32 %v4848_v21, %v3923_v22  ;;  %v4234_v18 = vor.u32 %v4929_v12, %v4233_v11  ;;  %v4925_v21 = vld [vmem:[#allocation4 + $0x1ac] sm:$0xf0]  ;;  %v4041_v40 = vld [vmem:[#allocation4 + $0x40] sm:$0xf]  ;;  %v4899_v11 = vld [vmem:[#allocation4 + $0xe4] sm:$0xf] }
  0xd3   :  { %1752 = vmatpush.bf16.msra.mxu1 %v3734_v30  ;;  %v5212_v23 = vpop.f32.mrf.mxu3  ;;  %v1502_v28 = vpop.f32.mrf.mxu1  ;;  %v3798_v30 = vor.u32 %v4816_v19, %v3795_v20  ;;  %v4089_v19 = vld [vmem:[#allocation4 + $0xa0] sm:$0xf]  ;;  %v4893_v20 = vld [vmem:[#allocation4 + $0xac] sm:$0xf0]  ;;  %v4123_v12 = vld [vmem:[#allocation4 + $0xf0] sm:$0xf0] }
  0xd4   :  { %1765 = vmatpush.bf16.msra.mxu2 %v3862_v32  ;;  %v4748_v32 = vld [vmem:[#allocation2 + $0x32c] sm:$0xf]  ;;  %v4090_v22 = vor.u32 %v4893_v20, %v4089_v19  ;;  %v4073_v27 = vld [vmem:[#allocation4 + $0x80] sm:$0xf]  ;;  %v4889_v28 = vld [vmem:[#allocation4 + $0x8c] sm:$0xf0] }
  0xd5   :  { %1778 = vmatpush.bf16.msra.mxu3 %v3990_v39  ;;  %v3651_v39 = vld [vmem:[#allocation2 + $0x438] sm:$0xf0]  ;;  %v4877_v56 = vld [vmem:[#allocation4 + $0x2c] sm:$0xf0] }
  0xd6   :  { %1740 = vmatpush.bf16.msra.mxu0 %v3590_v46  ;;  %v3526_v46 = vor.u32 %v4748_v32, %v3523_v34  ;;  %v4057_v34 = vld [vmem:[#allocation4 + $0x60] sm:$0xf] }
  0xd7   :  { %1753 = vmatpush.bf16.msra.mxu1 %v3718_v48  ;;  %v4744_v48 = vld [vmem:[#allocation2 + $0x30c] sm:$0xf] }
  0xd8   :  { %1766 = vmatpush.bf16.msra.mxu2 %v3846_v49  ;;  %v3654_v49 = vor.u32 %v4780_v35, %v3651_v39  ;;  %v3510_v62 = vor.u32 %v4744_v48, %v3507_v51  ;;  %v4885_v35 = vld [vmem:[#allocation4 + $0x6c] sm:$0xf0]  ;;  %v4169_v48 = vld [vmem:[#allocation4 + $0x140] sm:$0xf] }
  0xd9   :  { %1779 = vmatpush.bf16.msra.mxu3 %v3974_v53  ;;  %v3635_v53 = vld [vmem:[#allocation2 + $0x418] sm:$0xf0]  ;;  %v4917_v39 = vld [vmem:[#allocation4 + $0x16c] sm:$0xf0] }
  0xda   :  { %1741 = vmatpush.bf16.msra.mxu0 %v3574_v8  ;;  %v1515_v54 = vpop.f32.mrf.mxu2  ;;  %v3891_v8 = vld [vmem:[#allocation2 + $0x618] sm:$0xf0]  ;;  %v3638_v1 = vor.u32 %v4776_v52, %v3635_v53  ;;  %v299_v52 = vperm.slane %v5217_v24, 1  ;;  %v4042_v53 = vor.u32 %v4881_v43, %v4041_v40 }
  0xdb   :  { %1754 = vmatpush.bf16.msra.mxu1 %v3702_v9  ;;  %v4121_v9 = vld [vmem:[#allocation4 + $0xe0] sm:$0xf]  ;;  %v1528_v61 = vpop.f32.mrf.mxu3  ;;  %v3894_v3 = vor.u32 %v4840_v57, %v3891_v8 }
  0xdc   :  { %1767 = vmatpush.bf16.msra.mxu2 %v3830_v60  ;;  %v4901_v60 = vld [vmem:[#allocation4 + $0xec] sm:$0xf0]  ;;  %v4025_v54 = vld [vmem:[#allocation4 + $0x20] sm:$0xf] }
  0xdd   :  { %1780 = vmatpush.bf16.msra.mxu3 %v3958_v0  ;;  %v4933_v0 = vld [vmem:[#allocation4 + $0x1ec] sm:$0xf0]  ;;  %v4122_v4 = vor.u32 %v4901_v60, %v4121_v9  ;;  %v4361_v8 = vld [vmem:[#allocation4 + $0x2c0] sm:$0xf] }
  0xde   :  { %1742 = vmatpush.bf16.msra.mxu0 %v3558_v6  ;;  %v4250_v6 = vor.u32 %v4933_v0, %v4249_v63  ;;  %v4961_v9 = vld [vmem:[#allocation4 + $0x2cc] sm:$0xf0]  ;;  %v4153_v60 = vld [vmem:[#allocation4 + $0x120] sm:$0xf]  ;;  %v1527_v63 = vadd.f32 %v5212_v23, %v299_v52  ;;  %v4026_v0 = vor.u32 %v4877_v56, %v4025_v54  ;;  %v4251_v23 = vld [vmem:[#allocation4 + $0x1f0] sm:$0xf0] }
  0xdf   :  { %1755 = vmatpush.bf16.msra.mxu1 %v3686_v7  ;;  %v4105_v7 = vld [vmem:[#allocation4 + $0xc0] sm:$0xf]  ;;  %v4909_v61 = vld [vmem:[#allocation4 + $0x12c] sm:$0xf0]  ;;  %v4203_v54 = vld [vmem:[#allocation4 + $0x190] sm:$0xf0] }
  0xe0   :  { %1768 = vmatpush.bf16.msra.mxu2 %v3814_v10  ;;  %v4897_v10 = vld [vmem:[#allocation4 + $0xcc] sm:$0xf0]  ;;  %v4281_v56 = vld [vmem:[#allocation4 + $0x220] sm:$0xf] }
  0xe1   :  { %1781 = vmatpush.bf16.msra.mxu3 %v3942_v16  ;;  %v4106_v13 = vor.u32 %v4897_v10, %v4105_v7  ;;  %v1449_v16 = vadd.f32 %v5196_v31, %v1436_v5  ;;  %v4218_v31 = vor.u32 %v4925_v21, %v4217_v17  ;;  %v4957_v7 = vld [vmem:[#allocation4 + $0x2ac] sm:$0xf0]  ;;  %v4126_v21 = vor.u32 %v4899_v11, %v4123_v12  ;;  %v4379_v11 = vld [vmem:[#allocation4 + $0x2f0] sm:$0xf0]  ;;  %v4911_v12 = vld [vmem:[#allocation4 + $0x144] sm:$0xf] }
  0xe2   :  { %1743 = vmatpush.bf16.msra.mxu0 %v3542_v26  ;;  %v4905_v10 = vld [vmem:[#allocation4 + $0x10c] sm:$0xf0] }
  0xe3   :  { %1756 = vmatpush.bf16.msra.mxu1 %v3670_v29  ;;  %v1462_v26 = vadd.f32 %v5198_v44, %v1449_v16  ;;  %v4921_v29 = vld [vmem:[#allocation4 + $0x18c] sm:$0xf0]  ;;  %v4058_v44 = vor.u32 %v4885_v35, %v4057_v34  ;;  %v4313_v34 = vld [vmem:[#allocation4 + $0x260] sm:$0xf] }
  0xe4   :  { %1769 = vmatpush.bf16.msra.mxu2 %v3798_v30  ;;  %v4074_v30 = vor.u32 %v4889_v28, %v4073_v27  ;;  %v4895_v27 = vld [vmem:[#allocation4 + $0xc4] sm:$0xf]  ;;  %v4107_v28 = vld [vmem:[#allocation4 + $0xd0] sm:$0xf0]  ;;  %v4949_v35 = vld [vmem:[#allocation4 + $0x26c] sm:$0xf0] }
  0xe5   :  { %1782 = vmatpush.bf16.msra.mxu3 %v3926_v38  ;;  %v4185_v38 = vld [vmem:[#allocation4 + $0x160] sm:$0xf]  ;;  %v4314_v40 = vor.u32 %v4949_v35, %v4313_v34  ;;  %v4903_v34 = vld [vmem:[#allocation4 + $0x104] sm:$0xf]  ;;  %v4139_v35 = vld [vmem:[#allocation4 + $0x110] sm:$0xf0] }
  0xe6   :  { %1744 = vmatpush.bf16.msra.mxu0 %v3526_v46  ;;  %v4186_v42 = vor.u32 %v4917_v39, %v4185_v38  ;;  %v4377_v46 = vld [vmem:[#allocation4 + $0x2e0] sm:$0xf]  ;;  %v4891_v39 = vld [vmem:[#allocation4 + $0xa4] sm:$0xf] }
  0xe7   :  { %1757 = vmatpush.bf16.msra.mxu1 %v3654_v49  ;;  %v4913_v49 = vld [vmem:[#allocation4 + $0x14c] sm:$0xf0] }
  0xe8   :  { %1770 = vmatpush.bf16.msra.mxu2 %v3782_v50  ;;  %v4170_v25 = vor.u32 %v4913_v49, %v4169_v48  ;;  %v4887_v49 = vld [vmem:[#allocation4 + $0x84] sm:$0xf] }
  0xe9   :  { %1783 = vmatpush.bf16.msra.mxu3 %v3910_v55 }
  0xea   :  { %1745 = vmatpush.bf16.msra.mxu0 %v3510_v62  ;;  %v1539_v32 = vpop.f32.mrf.mxu0  ;;  %v4362_v62 = vor.u32 %v4961_v9, %v4361_v8 }
  0xeb   :  { %1758 = vmatpush.bf16.msra.mxu1 %v3638_v1  ;;  %v4009_v1 = vld [vmem:[#allocation4] sm:$0xf]  ;;  %v1540_v19 = vadd.f32 %v1539_v32, %v1527_v63  ;;  %v4915_v63 = vld [vmem:[#allocation4 + $0x164] sm:$0xf] }
  0xec   :  { %1771 = vmatpush.bf16.msra.mxu2 %v3766_v2  ;;  %v4873_v2 = vld [vmem:[#allocation4 + $0xc] sm:$0xf0] }
  0xed   :  { %1784 = vmatpush.bf16.msra.mxu3 %v3894_v3  ;;  %1746 = vmatmul.bf16.vlgmr.msra.gmra.mxu0 %v5152_v15  ;;  %v4201_v15 = vld [vmem:[#allocation4 + $0x180] sm:$0xf]  ;;  %v4010_v20 = vor.u32 %v4873_v2, %v4009_v1  ;;  %v4879_v2 = vld [vmem:[#allocation4 + $0x44] sm:$0xf] }
  0xee   :  { %2576 = vmatpush.bf16.msrb.mxu0 %v4122_v4  ;;  %1759 = vmatmul.bf16.vlgmr.msra.gmra.mxu1 %v5174_v36  ;;  %v1475_v36 = vadd.f32 %v5200_v47, %v1462_v26  ;;  %v4965_v47 = vld [vmem:[#allocation4 + $0x2ec] sm:$0xf0]  ;;  %v4137_v4 = vld [vmem:[#allocation4 + $0x100] sm:$0xf] }
  0xef   :  { %2589 = vmatpush.bf16.msrb.mxu1 %v4250_v6  ;;  %1772 = vmatmul.bf16.vlgmr.msra.gmra.mxu2 %v5176_v37  ;;  %v4202_v37 = vor.u32 %v4921_v29, %v4201_v15  ;;  %v4378_v51 = vor.u32 %v4965_v47, %v4377_v46  ;;  %v4345_v6 = vld [vmem:[#allocation4 + $0x2a0] sm:$0xf]  ;;  %v4953_v26 = vld [vmem:[#allocation4 + $0x28c] sm:$0xf0]  ;;  %v4927_v29 = vld [vmem:[#allocation4 + $0x1c4] sm:$0xf] }
  0xf0   :  { %1785 = vmatmul.bf16.vlgmr.msra.gmra.mxu3 %v5172_v33  ;;  %v5228_v33 = vpop.f32.mrf.mxu1  ;;  %v1488_v41 = vadd.f32 %v5206_v58, %v1475_v36  ;;  %v4346_v16 = vor.u32 %v4957_v7, %v4345_v6  ;;  %v4297_v46 = vld [vmem:[#allocation4 + $0x240] sm:$0xf]  ;;  %v4945_v47 = vld [vmem:[#allocation4 + $0x24c] sm:$0xf0] }
  0xf1   :  { %2602 = vmatpush.bf16.msrb.mxu2 %v4378_v51  ;;  %v1553_v36 = vadd.f32 %v5228_v33, %v1540_v19  ;;  %v4075_v51 = vld [vmem:[#allocation4 + $0x90] sm:$0xf0]  ;;  %v4298_v52 = vor.u32 %v4945_v47, %v4297_v46  ;;  %v4257_v46 = vld [vmem:[#allocation4 + $0x1e8] sm:$0xf]  ;;  %v4934_v47 = vld [vmem:[#allocation4 + $0x1f4] sm:$0xf0] }
  0xf2   :  { %2577 = vmatpush.bf16.msrb.mxu0 %v4106_v13  ;;  %v5231_v45 = vpop.f32.mrf.mxu2  ;;  %v1541_v55 = vpop.f32.mrf.mxu0  ;;  %v1501_v58 = vadd.f32 %v5208_v59, %v1488_v41  ;;  %v4154_v59 = vor.u32 %v4909_v61, %v4153_v60  ;;  %v4923_v41 = vld [vmem:[#allocation4 + $0x1a4] sm:$0xf]  ;;  %v4059_v61 = vld [vmem:[#allocation4 + $0x70] sm:$0xf0] }
  0xf3   :  { %2590 = vmatpush.bf16.msrb.mxu1 %v4234_v18  ;;  %v5233_v50 = vpop.f32.mrf.mxu3  ;;  %v4931_v18 = vld [vmem:[#allocation4 + $0x1e4] sm:$0xf]  ;;  %v1566_v33 = vadd.f32 %v5231_v45, %v1553_v36  ;;  %v4941_v45 = vld [vmem:[#allocation4 + $0x22c] sm:$0xf0] }
  0xf4   :  { %v1514_v3 = vadd.f32 %v5210_v14, %v1501_v58  ;;  %v4138_v14 = vor.u32 %v4905_v10, %v4137_v4  ;;  %v4883_v60 = vld [vmem:[#allocation4 + $0x64] sm:$0xf]  ;;  %v4937_v4 = vld [vmem:[#allocation4 + $0x20c] sm:$0xf0] }
  0xf5   :  { %2603 = vmatpush.bf16.msrb.mxu2 %v4362_v62  ;;  %v1579_v55 = vadd.f32 %v5233_v50, %v1566_v33  ;;  %v4282_v62 = vor.u32 %v4941_v45, %v4281_v56  ;;  %v4062_v50 = vor.u32 %v4883_v60, %v4059_v61  ;;  %v4963_v10 = vld [vmem:[#allocation4 + $0x2e4] sm:$0xf]  ;;  %v4258_v56 = vor.u32 %v4934_v47, %v4257_v46  ;;  %v4898_v45 = vld [vmem:[#allocation4 + $0xd4] sm:$0xf0]  ;;  %v4241_v60 = vld [vmem:[#allocation4 + $0x1c8] sm:$0xf] }
  0xf6   :  { %2578 = vmatpush.bf16.msrb.mxu0 %v4090_v22  ;;  %v1790_v17 = vmax.f32 %v1514_v3, 0.0  ;;  %v4329_v22 = vld [vmem:[#allocation4 + $0x280] sm:$0xf]  ;;  %v4043_v3 = vld [vmem:[#allocation4 + $0x50] sm:$0xf0] }
  0xf7   :  { %2591 = vmatpush.bf16.msrb.mxu1 %v4218_v31  ;;  %v4254_v31 = vor.u32 %v4931_v18, %v4251_v23  ;;  %v4330_v15 = vor.u32 %v4953_v26, %v4329_v22  ;;  %v4046_v19 = vor.u32 %v4879_v2, %v4043_v3  ;;  %v4027_v22 = vld [vmem:[#allocation4 + $0x30] sm:$0xf0]  ;;  %v4930_v61 = vld [vmem:[#allocation4 + $0x1d4] sm:$0xf0]  ;;  %v4989_v2 = vld [vmem:[#allocation4 + $0x3ac] sm:$0xf0] }
  0xf8   :  { %v1554_v57 = vpop.f32.mrf.mxu1  ;;  %v5240_v32 = vpack.c.bf16 %v1790_v17, %v1790_v17  ;;  %v4894_v3 = vld [vmem:[#allocation4 + $0xb4] sm:$0xf0]  ;;  %v4425_v46 = vld [vmem:[#allocation4 + $0x340] sm:$0xf]  ;;  %v4977_v47 = vld [vmem:[#allocation4 + $0x34c] sm:$0xf0] }
  0xf9   :  { %2604 = vmatpush.bf16.msrb.mxu2 %v4346_v16  ;;  %v4382_v16 = vor.u32 %v4963_v10, %v4379_v11 }
  0xfa   :  { %2579 = vmatpush.bf16.msrb.mxu0 %v4074_v30  ;;  %v1567_v5 = vpop.f32.mrf.mxu2  ;;  %v4235_v30 = vld [vmem:[#allocation4 + $0x1d0] sm:$0xf0] }
  0xfb   :  { %2592 = vmatpush.bf16.msrb.mxu1 %v4202_v37  ;;  %v1580_v13 = vpop.f32.mrf.mxu3  ;;  %v4110_v37 = vor.u32 %v4895_v27, %v4107_v28  ;;  %v4238_v38 = vor.u32 %v4927_v29, %v4235_v30  ;;  %v4363_v27 = vld [vmem:[#allocation4 + $0x2d0] sm:$0xf0]  ;;  %v4907_v28 = vld [vmem:[#allocation4 + $0x124] sm:$0xf] }
  0xfc   :  { %v4171_v13 = vld [vmem:[#allocation4 + $0x150] sm:$0xf0]  ;;  %v4871_v30 = vld [vmem:[#allocation4 + $0x4] sm:$0xf] }
  0xfd   :  { %2605 = vmatpush.bf16.msrb.mxu2 %v4330_v15  ;;  %v4155_v15 = vld [vmem:[#allocation4 + $0x130] sm:$0xf0] }
  0xfe   :  { %2580 = vmatpush.bf16.msrb.mxu0 %v4058_v44  ;;  %v4091_v44 = vld [vmem:[#allocation4 + $0xb0] sm:$0xf0] }
  0xff   :  { %2593 = vmatpush.bf16.msrb.mxu1 %v4186_v42  ;;  %v4219_v42 = vld [vmem:[#allocation4 + $0x1b0] sm:$0xf0]  ;;  %v4094_v43 = vor.u32 %v4891_v39, %v4091_v44  ;;  %v4505_v39 = vld [vmem:[#allocation4 + $0x3e0] sm:$0xf]  ;;  %v4997_v44 = vld [vmem:[#allocation4 + $0x3ec] sm:$0xf0] }
 0x100   :  { %v4222_v48 = vor.u32 %v4923_v41, %v4219_v42  ;;  %v4129_v41 = vld [vmem:[#allocation4 + $0xe8] sm:$0xf]  ;;  %v4902_v42 = vld [vmem:[#allocation4 + $0xf4] sm:$0xf0]  ;;  %v4506_v33 = vor.u32 %v4997_v44, %v4505_v39 }
 0x101   :  { %2606 = vmatpush.bf16.msrb.mxu2 %v4314_v40  ;;  %v4955_v40 = vld [vmem:[#allocation4 + $0x2a4] sm:$0xf]  ;;  %v4193_v39 = vld [vmem:[#allocation4 + $0x168] sm:$0xf]  ;;  %v4918_v44 = vld [vmem:[#allocation4 + $0x174] sm:$0xf0] }
 0x102   :  { %2581 = vmatpush.bf16.msrb.mxu0 %v4042_v53  ;;  %v4919_v53 = vld [vmem:[#allocation4 + $0x184] sm:$0xf]  ;;  %2615 = vmatpush.bf16.msrb.mxu3 %v4506_v33 }
 0x103   :  { %2594 = vmatpush.bf16.msrb.mxu1 %v4170_v25  ;;  %v4078_v25 = vor.u32 %v4887_v49, %v4075_v51  ;;  %v4206_v8 = vor.u32 %v4919_v53, %v4203_v54  ;;  %v4142_v53 = vor.u32 %v4903_v34, %v4139_v35  ;;  %v4130_v54 = vor.u32 %v4902_v42, %v4129_v41  ;;  %v4939_v35 = vld [vmem:[#allocation4 + $0x224] sm:$0xf] }
 0x105   :  { %2607 = vmatpush.bf16.msrb.mxu2 %v4298_v52 }
 0x106   :  { %2582 = vmatpush.bf16.msrb.mxu0 %v4026_v0  ;;  %v4187_v0 = vld [vmem:[#allocation4 + $0x170] sm:$0xf0] }
 0x107   :  { %2595 = vmatpush.bf16.msrb.mxu1 %v4154_v59  ;;  %v4265_v59 = vld [vmem:[#allocation4 + $0x200] sm:$0xf]  ;;  %v4190_v6 = vor.u32 %v4915_v63, %v4187_v0  ;;  %v4097_v0 = vld [vmem:[#allocation4 + $0xa8] sm:$0xf] }
 0x108   :  { %v4266_v7 = vor.u32 %v4937_v4, %v4265_v59  ;;  %v4947_v4 = vld [vmem:[#allocation4 + $0x264] sm:$0xf]  ;;  %v4098_v11 = vor.u32 %v4894_v3, %v4097_v0  ;;  %v4910_v0 = vld [vmem:[#allocation4 + $0x134] sm:$0xf0] }
 0x109   :  { %2608 = vmatpush.bf16.msrb.mxu2 %v4282_v62 }
 0x10a   :  { %2583 = vmatpush.bf16.msrb.mxu0 %v4010_v20  ;;  %v1591_v58 = vpop.f32.mrf.mxu0  ;;  %v4875_v20 = vld [vmem:[#allocation4 + $0x24] sm:$0xf] }
 0x10b   :  { %2596 = vmatpush.bf16.msrb.mxu1 %v4138_v14  ;;  %v1592_v57 = vadd.f32 %v1591_v58, %v1579_v55  ;;  %v1604_v9 = vpop.f32.mrf.mxu1  ;;  %v4030_v36 = vor.u32 %v4875_v20, %v4027_v22  ;;  %v4113_v55 = vld [vmem:[#allocation4 + $0xc8] sm:$0xf]  ;;  %v4489_v58 = vld [vmem:[#allocation4 + $0x3c0] sm:$0xf]  ;;  %v4299_v22 = vld [vmem:[#allocation4 + $0x250] sm:$0xf0] }
 0x10c   :  { %v4114_v63 = vor.u32 %v4898_v45, %v4113_v55  ;;  %v4081_v20 = vld [vmem:[#allocation4 + $0x88] sm:$0xf] }
 0x10d   :  { %2584 = vmatmul.bf16.vlgmr.msrb.gmra.mxu0 %v5240_v32  ;;  %v1605_v1 = vadd.f32 %v1604_v9, %v1592_v57  ;;  %2609 = vmatpush.bf16.msrb.mxu2 %v4266_v7  ;;  %v4331_v9 = vld [vmem:[#allocation4 + $0x290] sm:$0xf0]  ;;  %v4926_v7 = vld [vmem:[#allocation4 + $0x1b4] sm:$0xf0]  ;;  %v4177_v55 = vld [vmem:[#allocation4 + $0x148] sm:$0xf] }
 0x10e   :  { %2628 = vmatpush.bf16.msra.mxu0 %v4126_v21  ;;  %v4174_v21 = vor.u32 %v4911_v12, %v4171_v13  ;;  %v4457_v12 = vld [vmem:[#allocation4 + $0x380] sm:$0xf]  ;;  %v4985_v13 = vld [vmem:[#allocation4 + $0x38c] sm:$0xf0] }
 0x10f   :  { %2641 = vmatpush.bf16.msra.mxu1 %v4254_v31  ;;  %v1791_v5 = vmax.f32 %v1605_v1, 0.0  ;;  %v4959_v31 = vld [vmem:[#allocation4 + $0x2c4] sm:$0xf]  ;;  %v4473_v1 = vld [vmem:[#allocation4 + $0x3a0] sm:$0xf] }
 0x110   :  { %v4366_v29 = vor.u32 %v4959_v31, %v4363_v27  ;;  %v4474_v59 = vor.u32 %v4989_v2, %v4473_v1  ;;  %v4922_v31 = vld [vmem:[#allocation4 + $0x194] sm:$0xf0] }
 0x111   :  { %v5245_v18 = vpack.c.bf16 %v1791_v5, %v1791_v5  ;;  %2654 = vmatpush.bf16.msra.mxu2 %v4382_v16  ;;  %v4315_v5 = vld [vmem:[#allocation4 + $0x270] sm:$0xf0]  ;;  %v4943_v16 = vld [vmem:[#allocation4 + $0x244] sm:$0xf] }
 0x112   :  { %2629 = vmatpush.bf16.msra.mxu0 %v4110_v37  ;;  %v5247_v23 = vpop.f32.mrf.mxu2  ;;  %v1593_v14 = vpop.f32.mrf.mxu0  ;;  %v4011_v37 = vld [vmem:[#allocation4 + $0x10] sm:$0xf0]  ;;  %v4318_v10 = vor.u32 %v4947_v4, %v4315_v5  ;;  %v4302_v27 = vor.u32 %v4943_v16, %v4299_v22  ;;  %v4874_v4 = vld [vmem:[#allocation4 + $0x14] sm:$0xf0]  ;;  %v4393_v5 = vld [vmem:[#allocation4 + $0x300] sm:$0xf] }
 0x113   :  { %2642 = vmatpush.bf16.msra.mxu1 %v4238_v38  ;;  %v5249_v17 = vpop.f32.mrf.mxu3  ;;  %v1606_v26 = vpop.f32.mrf.mxu1  ;;  %v4158_v38 = vor.u32 %v4907_v28, %v4155_v15  ;;  %v4014_v51 = vor.u32 %v4871_v30, %v4011_v37  ;;  %v4890_v14 = vld [vmem:[#allocation4 + $0x94] sm:$0xf0]  ;;  %v4065_v15 = vld [vmem:[#allocation4 + $0x68] sm:$0xf]  ;;  %v4981_v30 = vld [vmem:[#allocation4 + $0x36c] sm:$0xf0] }
 0x114   :  { %2597 = vmatmul.bf16.vlgmr.msrb.gmra.mxu1 %v5245_v18  ;;  %v4209_v26 = vld [vmem:[#allocation4 + $0x188] sm:$0xf]  ;;  %v4082_v28 = vor.u32 %v4890_v14, %v4081_v20  ;;  %v4886_v37 = vld [vmem:[#allocation4 + $0x74] sm:$0xf0]  ;;  %v4131_v20 = vld [vmem:[#allocation4 + $0xf8] sm:$0xf0] }
 0x115   :  { %2655 = vmatpush.bf16.msra.mxu2 %v4366_v29  ;;  %v4441_v29 = vld [vmem:[#allocation4 + $0x360] sm:$0xf]  ;;  %v4066_v33 = vor.u32 %v4886_v37, %v4065_v15  ;;  %v4906_v16 = vld [vmem:[#allocation4 + $0x114] sm:$0xf0]  ;;  %v4259_v22 = vld [vmem:[#allocation4 + $0x1f8] sm:$0xf0] }
 0x116   :  { %2630 = vmatpush.bf16.msra.mxu0 %v4094_v43  ;;  %v4347_v43 = vld [vmem:[#allocation4 + $0x2b0] sm:$0xf0]  ;;  %v4442_v34 = vor.u32 %v4981_v30, %v4441_v29  ;;  %v4991_v29 = vld [vmem:[#allocation4 + $0x3c4] sm:$0xf]  ;;  %v4896_v37 = vld [vmem:[#allocation4 + $0xcc] sm:$0xf] }
 0x117   :  { %2643 = vmatpush.bf16.msra.mxu1 %v4222_v48  ;;  %v4350_v49 = vor.u32 %v4955_v40, %v4347_v43  ;;  %v4049_v43 = vld [vmem:[#allocation4 + $0x48] sm:$0xf]  ;;  %v4491_v30 = vld [vmem:[#allocation4 + $0x3d0] sm:$0xf0] }
 0x119   :  { %2656 = vmatpush.bf16.msra.mxu2 %v4350_v49  ;;  %v4882_v49 = vld [vmem:[#allocation4 + $0x54] sm:$0xf0] }
 0x11a   :  { %2631 = vmatpush.bf16.msra.mxu0 %v4078_v25  ;;  %v1619_v48 = vpop.f32.mrf.mxu2  ;;  %v4993_v25 = vld [vmem:[#allocation4 + $0x3cc] sm:$0xf0]  ;;  %v4050_v45 = vor.u32 %v4882_v49, %v4049_v43  ;;  %v4924_v49 = vld [vmem:[#allocation4 + $0x1ac] sm:$0xf] }
 0x11b   :  { %2644 = vmatpush.bf16.msra.mxu1 %v4206_v8  ;;  %v1632_v52 = vpop.f32.mrf.mxu3  ;;  %v4490_v57 = vor.u32 %v4993_v25, %v4489_v58  ;;  %v4951_v8 = vld [vmem:[#allocation4 + $0x284] sm:$0xf]  ;;  %v4194_v48 = vor.u32 %v4918_v44, %v4193_v39  ;;  %v4914_v58 = vld [vmem:[#allocation4 + $0x154] sm:$0xf0]  ;;  %v4243_v39 = vld [vmem:[#allocation4 + $0x1d8] sm:$0xf0] }
 0x11c   :  { %v4334_v62 = vor.u32 %v4951_v8, %v4331_v9  ;;  %v4935_v52 = vld [vmem:[#allocation4 + $0x204] sm:$0xf]  ;;  %v4409_v8 = vld [vmem:[#allocation4 + $0x320] sm:$0xf]  ;;  %v4178_v9 = vor.u32 %v4914_v58, %v4177_v55  ;;  %v4888_v58 = vld [vmem:[#allocation4 + $0x8c] sm:$0xf] }
 0x11d   :  { %2616 = vmatpush.bf16.msrb.mxu3 %v4490_v57 }
 0x11e   :  { %2632 = vmatpush.bf16.msra.mxu0 %v4062_v50  ;;  %v4242_v50 = vor.u32 %v4930_v61, %v4241_v60  ;;  %2657 = vmatpush.bf16.msra.mxu2 %v4334_v62  ;;  %v4033_v60 = vld [vmem:[#allocation4 + $0x28] sm:$0xf]  ;;  %v4878_v61 = vld [vmem:[#allocation4 + $0x34] sm:$0xf0]  ;;  %v4973_v62 = vld [vmem:[#allocation4 + $0x32c] sm:$0xf0] }
 0x11f   :  { %2645 = vmatpush.bf16.msra.mxu1 %v4190_v6  ;;  %v4225_v6 = vld [vmem:[#allocation4 + $0x1a8] sm:$0xf]  ;;  %v4410_v2 = vor.u32 %v4973_v62, %v4409_v8  ;;  %v4920_v8 = vld [vmem:[#allocation4 + $0x18c] sm:$0xf]  ;;  %v4443_v62 = vld [vmem:[#allocation4 + $0x370] sm:$0xf0] }
 0x121   :  { %2617 = vmatpush.bf16.msrb.mxu3 %v4474_v59  ;;  %v4034_v59 = vor.u32 %v4878_v61, %v4033_v60  ;;  %v4979_v61 = vld [vmem:[#allocation4 + $0x364] sm:$0xf] }
 0x122   :  { %2633 = vmatpush.bf16.msra.mxu0 %v4046_v19  ;;  %v4226_v19 = vor.u32 %v4926_v7, %v4225_v6  ;;  %2658 = vmatpush.bf16.msra.mxu2 %v4318_v10  ;;  %v4969_v6 = vld [vmem:[#allocation4 + $0x30c] sm:$0xf0]  ;;  %v4145_v10 = vld [vmem:[#allocation4 + $0x108] sm:$0xf] }
 0x123   :  { %2646 = vmatpush.bf16.msra.mxu1 %v4174_v21  ;;  %v4458_v21 = vor.u32 %v4985_v13, %v4457_v12  ;;  %v4995_v12 = vld [vmem:[#allocation4 + $0x3e4] sm:$0xf]  ;;  %v4507_v13 = vld [vmem:[#allocation4 + $0x3f0] sm:$0xf0] }
 0x124   :  { %v4510_v14 = vor.u32 %v4995_v12, %v4507_v13  ;;  %v4880_v13 = vld [vmem:[#allocation4 + $0x4c] sm:$0xf] }
 0x125   :  { %2618 = vmatpush.bf16.msrb.mxu3 %v4458_v21  ;;  %v4932_v21 = vld [vmem:[#allocation4 + $0x1ec] sm:$0xf] }
 0x126   :  { %2634 = vmatpush.bf16.msra.mxu0 %v4030_v36  ;;  %v4210_v36 = vor.u32 %v4922_v31, %v4209_v26  ;;  %2659 = vmatpush.bf16.msra.mxu2 %v4302_v27 }
 0x127   :  { %2647 = vmatpush.bf16.msra.mxu1 %v4158_v38  ;;  %v4283_v38 = vld [vmem:[#allocation4 + $0x230] sm:$0xf0] }
 0x128   :  { %v4286_v41 = vor.u32 %v4939_v35, %v4283_v38  ;;  %v4494_v35 = vor.u32 %v4991_v29, %v4491_v30  ;;  %v4928_v38 = vld [vmem:[#allocation4 + $0x1cc] sm:$0xf] }
 0x129   :  { %2619 = vmatpush.bf16.msrb.mxu3 %v4442_v34  ;;  %v4115_v34 = vld [vmem:[#allocation4 + $0xd8] sm:$0xf0] }
 0x12a   :  { %2635 = vmatpush.bf16.msra.mxu0 %v4014_v51  ;;  %v5254_v40 = vpop.f32.mrf.mxu0  ;;  %2660 = vmatpush.bf16.msra.mxu2 %v4286_v41  ;;  %v4426_v51 = vor.u32 %v4977_v47, %v4425_v46  ;;  %v4118_v44 = vor.u32 %v4896_v37, %v4115_v34  ;;  %v4987_v41 = vld [vmem:[#allocation4 + $0x3a4] sm:$0xf]  ;;  %v4246_v46 = vor.u32 %v4928_v38, %v4243_v39  ;;  %v4892_v47 = vld [vmem:[#allocation4 + $0xac] sm:$0xf] }
 0x12b   :  { %2648 = vmatpush.bf16.msra.mxu1 %v4142_v53  ;;  %v5256_v42 = vpop.f32.mrf.mxu1  ;;  %v4267_v53 = vld [vmem:[#allocation4 + $0x210] sm:$0xf0]  ;;  %v4908_v34 = vld [vmem:[#allocation4 + $0x12c] sm:$0xf] }
 0x12c   :  { %v4270_v25 = vor.u32 %v4935_v52, %v4267_v53  ;;  %v4983_v52 = vld [vmem:[#allocation4 + $0x384] sm:$0xf]  ;;  %v4459_v53 = vld [vmem:[#allocation4 + $0x390] sm:$0xf0] }
 0x12d   :  { %2636 = vmatmul.bf16.vlgmr.msra.gmra.mxu0 %v5240_v32  ;;  %2620 = vmatpush.bf16.msrb.mxu3 %v4426_v51  ;;  %v4227_v51 = vld [vmem:[#allocation4 + $0x1b8] sm:$0xf0] }
 0x12e   :  { %2680 = vmatpush.bf16.msrb.mxu0 %v4130_v54  ;;  %2649 = vmatmul.bf16.vlgmr.msra.gmra.mxu1 %v5245_v18  ;;  %v300_v54 = vperm.slane %v5217_v24, 2  ;;  %v4161_v24 = vld [vmem:[#allocation4 + $0x128] sm:$0xf] }
 0x12f   :  { %2693 = vmatpush.bf16.msrb.mxu1 %v4258_v56  ;;  %2661 = vmatpush.bf16.msra.mxu2 %v4270_v25  ;;  %v4162_v7 = vor.u32 %v4910_v0, %v4161_v24  ;;  %v4083_v25 = vld [vmem:[#allocation4 + $0x98] sm:$0xf0]  ;;  %v4884_v0 = vld [vmem:[#allocation4 + $0x6c] sm:$0xf] }
 0x130   :  { %v4086_v60 = vor.u32 %v4888_v58, %v4083_v25 }
 0x131   :  { %2621 = vmatpush.bf16.msrb.mxu3 %v4410_v2 }
 0x132   :  { %2681 = vmatpush.bf16.msrb.mxu0 %v4114_v63  ;;  %v5259_v56 = vpop.f32.mrf.mxu2  ;;  %v1618_v63 = vadd.f32 %v5247_v23, %v300_v54  ;;  %v1645_v1 = vpop.f32.mrf.mxu0 }
 0x133   :  { %2694 = vmatpush.bf16.msrb.mxu1 %v4242_v50  ;;  %v5261_v57 = vpop.f32.mrf.mxu3  ;;  %v4017_v50 = vld [vmem:[#allocation4 + $0x8] sm:$0xf]  ;;  %v1658_v3 = vpop.f32.mrf.mxu1  ;;  %v4067_v1 = vld [vmem:[#allocation4 + $0x78] sm:$0xf0] }
 0x134   :  { %v1631_v23 = vadd.f32 %v5249_v17, %v1618_v63  ;;  %v4018_v31 = vor.u32 %v4874_v4, %v4017_v50  ;;  %v4262_v17 = vor.u32 %v4932_v21, %v4259_v22  ;;  %v4916_v50 = vld [vmem:[#allocation4 + $0x16c] sm:$0xf]  ;;  %v4195_v3 = vld [vmem:[#allocation4 + $0x178] sm:$0xf0]  ;;  %v4385_v4 = vld [vmem:[#allocation4 + $0x2e8] sm:$0xf] }
 0x135   :  { %v4369_v22 = vld [vmem:[#allocation4 + $0x2c8] sm:$0xf] }
 0x136   :  { %2682 = vmatpush.bf16.msrb.mxu0 %v4098_v11  ;;  %v4394_v11 = vor.u32 %v4969_v6, %v4393_v5  ;;  %v4966_v5 = vld [vmem:[#allocation4 + $0x2f4] sm:$0xf0]  ;;  %v4070_v6 = vor.u32 %v4884_v0, %v4067_v1  ;;  %v4305_v1 = vld [vmem:[#allocation4 + $0x248] sm:$0xf] }
 0x137   :  { %2695 = vmatpush.bf16.msrb.mxu1 %v4226_v19  ;;  %v4900_v19 = vld [vmem:[#allocation4 + $0xec] sm:$0xf] }
 0x138   :  { %2622 = vmatpush.bf16.msrb.mxu3 %v4394_v11  ;;  %v4134_v15 = vor.u32 %v4900_v19, %v4131_v20  ;;  %v4427_v11 = vld [vmem:[#allocation4 + $0x350] sm:$0xf0]  ;;  %v4912_v19 = vld [vmem:[#allocation4 + $0x14c] sm:$0xf]  ;;  %v4179_v20 = vld [vmem:[#allocation4 + $0x158] sm:$0xf0] }
 0x13a   :  { %2683 = vmatpush.bf16.msrb.mxu0 %v4082_v28  ;;  %v1671_v26 = vpop.f32.mrf.mxu2  ;;  %v4146_v28 = vor.u32 %v4906_v16, %v4145_v10  ;;  %v4975_v10 = vld [vmem:[#allocation4 + $0x344] sm:$0xf]  ;;  %v4386_v16 = vor.u32 %v4966_v5, %v4385_v4 }
 0x13b   :  { %2696 = vmatpush.bf16.msrb.mxu1 %v4210_v36  ;;  %v1684_v27 = vpop.f32.mrf.mxu3  ;;  %v1644_v36 = vadd.f32 %v5254_v40, %v1631_v23  ;;  %v4051_v23 = vld [vmem:[#allocation4 + $0x58] sm:$0xf0]  ;;  %v4962_v26 = vld [vmem:[#allocation4 + $0x2d4] sm:$0xf0] }
 0x13c   :  { %2667 = vmatpush.bf16.msra.mxu3 %v4510_v14  ;;  %v4430_v14 = vor.u32 %v4975_v10, %v4427_v11  ;;  %v4971_v27 = vld [vmem:[#allocation4 + $0x324] sm:$0xf]  ;;  %v4370_v37 = vor.u32 %v4962_v26, %v4369_v22  ;;  %v4273_v10 = vld [vmem:[#allocation4 + $0x208] sm:$0xf]  ;;  %v4938_v11 = vld [vmem:[#allocation4 + $0x214] sm:$0xf0] }
 0x13d   :  { %v1657_v43 = vadd.f32 %v5256_v42, %v1644_v36  ;;  %v4230_v42 = vor.u32 %v4924_v49, %v4227_v51  ;;  %v4876_v36 = vld [vmem:[#allocation4 + $0x2c] sm:$0xf] }
 0x13e   :  { %2684 = vmatpush.bf16.msrb.mxu0 %v4066_v33  ;;  %v4475_v33 = vld [vmem:[#allocation4 + $0x3b0] sm:$0xf0]  ;;  %v4872_v49 = vld [vmem:[#allocation4 + $0xc] sm:$0xf] }
 0x13f   :  { %2697 = vmatpush.bf16.msrb.mxu1 %v4194_v48  ;;  %v4099_v48 = vld [vmem:[#allocation4 + $0xb8] sm:$0xf0]  ;;  %v4478_v40 = vor.u32 %v4987_v41, %v4475_v33  ;;  %v1670_v55 = vadd.f32 %v5259_v56, %v1657_v43  ;;  %v4446_v56 = vor.u32 %v4979_v61, %v4443_v62  ;;  %v4958_v41 = vld [vmem:[#allocation4 + $0x2b4] sm:$0xf0]  ;;  %v4321_v62 = vld [vmem:[#allocation4 + $0x268] sm:$0xf] }
 0x140   :  { %2668 = vmatpush.bf16.msra.mxu3 %v4494_v35  ;;  %v4102_v54 = vor.u32 %v4892_v47, %v4099_v48  ;;  %v4163_v35 = vld [vmem:[#allocation4 + $0x138] sm:$0xf0]  ;;  %v4395_v47 = vld [vmem:[#allocation4 + $0x310] sm:$0xf0] }
 0x141   :  { %v1683_v63 = vadd.f32 %v5261_v57, %v1670_v55  ;;  %v4198_v57 = vor.u32 %v4916_v50, %v4195_v3  ;;  %v4166_v48 = vor.u32 %v4908_v34, %v4163_v35  ;;  %v4337_v55 = vld [vmem:[#allocation4 + $0x288] sm:$0xf]  ;;  %v4952_v35 = vld [vmem:[#allocation4 + $0x28c] sm:$0xf] }
 0x142   :  { %2685 = vmatpush.bf16.msrb.mxu0 %v4050_v45  ;;  %v4462_v45 = vor.u32 %v4983_v52, %v4459_v53  ;;  %v4904_v52 = vld [vmem:[#allocation4 + $0x10c] sm:$0xf]  ;;  %v4147_v53 = vld [vmem:[#allocation4 + $0x118] sm:$0xf0]  ;;  %v4289_v3 = vld [vmem:[#allocation4 + $0x228] sm:$0xf] }
 0x143   :  { %2698 = vmatpush.bf16.msrb.mxu1 %v4178_v9  ;;  %v4211_v9 = vld [vmem:[#allocation4 + $0x198] sm:$0xf0]  ;;  %v4150_v25 = vor.u32 %v4904_v52, %v4147_v53 }
 0x144   :  { %2669 = vmatpush.bf16.msra.mxu3 %v4478_v40  ;;  %v4214_v24 = vor.u32 %v4920_v8, %v4211_v9  ;;  %v4019_v40 = vld [vmem:[#allocation4 + $0x18] sm:$0xf0] }
 0x145   :  { %v4022_v58 = vor.u32 %v4872_v49, %v4019_v40  ;;  %v4323_v49 = vld [vmem:[#allocation4 + $0x278] sm:$0xf0]  ;;  %v4481_v40 = vld [vmem:[#allocation4 + $0x3a8] sm:$0xf] }
 0x146   :  { %2686 = vmatpush.bf16.msrb.mxu0 %v4034_v59 }
 0x147   :  { %2699 = vmatpush.bf16.msrb.mxu1 %v4162_v7 }
 0x148   :  { %2670 = vmatpush.bf16.msra.mxu3 %v4462_v45 }
 0x14a   :  { %2687 = vmatpush.bf16.msrb.mxu0 %v4018_v31  ;;  %v1695_v2 = vpop.f32.mrf.mxu0  ;;  %v4054_v31 = vor.u32 %v4880_v13, %v4051_v23  ;;  %v4274_v13 = vor.u32 %v4938_v11, %v4273_v10  ;;  %v4960_v23 = vld [vmem:[#allocation4 + $0x2cc] sm:$0xf]  ;;  %v4401_v11 = vld [vmem:[#allocation4 + $0x308] sm:$0xf] }
 0x14b   :  { %2700 = vmatpush.bf16.msrb.mxu1 %v4146_v28  ;;  %v1696_v59 = vadd.f32 %v1695_v2, %v1683_v63  ;;  %v5271_v7 = vpop.f32.mrf.mxu1  ;;  %v4411_v28 = vld [vmem:[#allocation4 + $0x330] sm:$0xf0]  ;;  %v4950_v63 = vld [vmem:[#allocation4 + $0x274] sm:$0xf0] }
 0x14c   :  { %2671 = vmatpush.bf16.msra.mxu3 %v4446_v56  ;;  %v4414_v39 = vor.u32 %v4971_v27, %v4411_v28  ;;  %v4946_v56 = vld [vmem:[#allocation4 + $0x254] sm:$0xf0]  ;;  %v4956_v28 = vld [vmem:[#allocation4 + $0x2ac] sm:$0xf] }
 0x14d   :  { %2688 = vmatmul.bf16.vlgmr.msrb.gmra.mxu0 %v5240_v32  ;;  %v1792_v12 = vmax.f32 %v1696_v59, 0.0  ;;  %v4306_v2 = vor.u32 %v4946_v56, %v4305_v1  ;;  %v4942_v59 = vld [vmem:[#allocation4 + $0x234] sm:$0xf0]  ;;  %v4433_v56 = vld [vmem:[#allocation4 + $0x348] sm:$0xf] }
 0x14e   :  { %2732 = vmatpush.bf16.msra.mxu0 %v4134_v15  ;;  %2701 = vmatmul.bf16.vlgmr.msrb.gmra.mxu1 %v5245_v18  ;;  %v4182_v15 = vor.u32 %v4912_v19, %v4179_v20  ;;  %v4290_v4 = vor.u32 %v4942_v59, %v4289_v3  ;;  %v4417_v59 = vld [vmem:[#allocation4 + $0x328] sm:$0xf] }
 0x14f   :  { %2745 = vmatpush.bf16.msra.mxu1 %v4262_v17  ;;  %v5273_v21 = vpack.c.bf16 %v1792_v12, %v1792_v12  ;;  %v4035_v17 = vld [vmem:[#allocation4 + $0x38] sm:$0xf0]  ;;  %v4964_v12 = vld [vmem:[#allocation4 + $0x2ec] sm:$0xf] }
 0x150   :  { %2672 = vmatpush.bf16.msra.mxu3 %v4430_v14  ;;  %v4038_v33 = vor.u32 %v4876_v36, %v4035_v17  ;;  %v4998_v36 = vld [vmem:[#allocation4 + $0x3f4] sm:$0xf0] }
 0x151   :  { %2610 = vmatmul.bf16.vlgmr.msrb.gmra.mxu2 %v5273_v21 }
 0x152   :  { %2733 = vmatpush.bf16.msra.mxu0 %v4118_v44  ;;  %v1721_v29 = vpop.f32.mrf.mxu2  ;;  %2706 = vmatpush.bf16.msrb.mxu2 %v4386_v16  ;;  %v1697_v38 = vpop.f32.mrf.mxu0  ;;  %v4353_v44 = vld [vmem:[#allocation4 + $0x2a8] sm:$0xf]  ;;  %v4371_v16 = vld [vmem:[#allocation4 + $0x2d8] sm:$0xf0] }
 0x153   :  { %2746 = vmatpush.bf16.msra.mxu1 %v4246_v46  ;;  %v1734_v30 = vpop.f32.mrf.mxu3  ;;  %v1710_v43 = vpop.f32.mrf.mxu1  ;;  %v4967_v46 = vld [vmem:[#allocation4 + $0x304] sm:$0xf]  ;;  %v4354_v51 = vor.u32 %v4958_v41, %v4353_v44  ;;  %v4339_v38 = vld [vmem:[#allocation4 + $0x298] sm:$0xf0]  ;;  %v4497_v44 = vld [vmem:[#allocation4 + $0x3c8] sm:$0xf] }
 0x154   :  { %2673 = vmatpush.bf16.msra.mxu3 %v4414_v39  ;;  %v4994_v41 = vld [vmem:[#allocation4 + $0x3d4] sm:$0xf0] }
 0x156   :  { %2734 = vmatpush.bf16.msra.mxu0 %v4102_v54  ;;  %2707 = vmatpush.bf16.msrb.mxu2 %v4370_v37  ;;  %v4398_v54 = vor.u32 %v4967_v46, %v4395_v47  ;;  %v4342_v46 = vor.u32 %v4952_v35, %v4339_v38  ;;  %v4498_v47 = vor.u32 %v4994_v41, %v4497_v44  ;;  %v4976_v35 = vld [vmem:[#allocation4 + $0x34c] sm:$0xf]  ;;  %v4435_v38 = vld [vmem:[#allocation4 + $0x358] sm:$0xf0] }
 0x157   :  { %2747 = vmatpush.bf16.msra.mxu1 %v4230_v42  ;;  %v4954_v42 = vld [vmem:[#allocation4 + $0x294] sm:$0xf0]  ;;  %v4438_v41 = vor.u32 %v4976_v35, %v4435_v38 }
 0x158   :  { %v4338_v9 = vor.u32 %v4954_v42, %v4337_v55  ;;  %2674 = vmatpush.bf16.msra.mxu3 %v4398_v54  ;;  %v4944_v54 = vld [vmem:[#allocation4 + $0x24c] sm:$0xf]  ;;  %v4307_v55 = vld [vmem:[#allocation4 + $0x258] sm:$0xf0]  ;;  %v4465_v42 = vld [vmem:[#allocation4 + $0x388] sm:$0xf] }
 0x15a   :  { %2735 = vmatpush.bf16.msra.mxu0 %v4086_v60  ;;  %v1723_v45 = vpop.f32.mrf.mxu2  ;;  %2708 = vmatpush.bf16.msrb.mxu2 %v4354_v51  ;;  %v5036_v60 = vld [vmem:[%s5416_s2] sm:$0xf]  ;;  %v4990_v51 = vld [vmem:[#allocation4 + $0x3b4] sm:$0xf0] }
 0x15b   :  { %2748 = vmatpush.bf16.msra.mxu1 %v4214_v24  ;;  %v1736_v8 = vpop.f32.mrf.mxu3  ;;  %v301_v61 = vperm.slane %v5036_v60, 3  ;;  %v4322_v24 = vor.u32 %v4950_v63, %v4321_v62  ;;  %v4482_v53 = vor.u32 %v4990_v51, %v4481_v40  ;;  %v4449_v60 = vld [vmem:[#allocation4 + $0x368] sm:$0xf]  ;;  %v4968_v40 = vld [vmem:[#allocation4 + $0x30c] sm:$0xf] }
 0x15c   :  { %v4940_v8 = vld [vmem:[#allocation4 + $0x22c] sm:$0xf]  ;;  %v4403_v51 = vld [vmem:[#allocation4 + $0x318] sm:$0xf0] }
 0x15d   :  { %v1709_v0 = vadd.f32 %v5271_v7, %v301_v61  ;;  %v4982_v61 = vld [vmem:[#allocation4 + $0x374] sm:$0xf0] }
 0x15e   :  { %2736 = vmatpush.bf16.msra.mxu0 %v4070_v6  ;;  %2709 = vmatpush.bf16.msrb.mxu2 %v4338_v9  ;;  %v4291_v9 = vld [vmem:[#allocation4 + $0x238] sm:$0xf0]  ;;  %v4450_v63 = vor.u32 %v4982_v61, %v4449_v60  ;;  %v5003_v61 = vld [vmem:[%s5419_s5 + $0x20] sm:$0xff] }
 0x15f   :  { %2749 = vmatpush.bf16.msra.mxu1 %v4198_v57  ;;  %v1722_v50 = vadd.f32 %v1721_v29, %v1709_v0  ;;  %v4294_v62 = vor.u32 %v4940_v8, %v4291_v9  ;;  %v4275_v0 = vld [vmem:[#allocation4 + $0x218] sm:$0xf0]  ;;  %v5005_v8 = vld [vmem:[%s5419_s5 + $0x30] sm:$0xff] }
 0x161   :  { %2662 = vmatmul.bf16.vlgmr.msra.gmra.mxu2 %v5273_v21  ;;  %v1735_v5 = vadd.f32 %v1734_v30, %v1722_v50  ;;  %v4513_v30 = vld [vmem:[#allocation4 + $0x3e8] sm:$0xf] }
 0x162   :  { %2737 = vmatpush.bf16.msra.mxu0 %v4054_v31  ;;  %2710 = vmatpush.bf16.msrb.mxu2 %v4322_v24  ;;  %v4374_v31 = vor.u32 %v4960_v23, %v4371_v16  ;;  %v4514_v34 = vor.u32 %v4998_v36, %v4513_v30  ;;  %v4936_v24 = vld [vmem:[#allocation4 + $0x20c] sm:$0xf]  ;;  %v4499_v16 = vld [vmem:[#allocation4 + $0x3d8] sm:$0xf0] }
 0x163   :  { %2750 = vmatpush.bf16.msra.mxu1 %v4182_v15  ;;  %v4355_v15 = vld [vmem:[#allocation4 + $0x2b8] sm:$0xf0]  ;;  %v4278_v50 = vor.u32 %v4936_v24, %v4275_v0  ;;  %v4992_v23 = vld [vmem:[#allocation4 + $0x3cc] sm:$0xf]  ;;  %v5001_v0 = vld [vmem:[%s5419_s5 + $0x10] sm:$0xff] }
 0x164   :  { %v4358_v37 = vor.u32 %v4956_v28, %v4355_v15  ;;  %v4467_v28 = vld [vmem:[#allocation4 + $0x398] sm:$0xf0]  ;;  %v4980_v30 = vld [vmem:[#allocation4 + $0x36c] sm:$0xf] }
 0x165   :  { %v4451_v36 = vld [vmem:[#allocation4 + $0x378] sm:$0xf0] }
 0x166   :  { %2738 = vmatpush.bf16.msra.mxu0 %v4038_v33  ;;  %2711 = vmatpush.bf16.msrb.mxu2 %v4306_v2  ;;  %v4978_v2 = vld [vmem:[#allocation4 + $0x354] sm:$0xf0] }
 0x167   :  { %2751 = vmatpush.bf16.msra.mxu1 %v4166_v48  ;;  %v4948_v48 = vld [vmem:[#allocation4 + $0x26c] sm:$0xf]  ;;  %v4434_v3 = vor.u32 %v4978_v2, %v4433_v56 }
 0x168   :  { %v4326_v52 = vor.u32 %v4948_v48, %v4323_v49  ;;  %v5000_v2 = vld [vmem:[%s5419_s5 + $0x8] sm:$0xff] }
 0x16a   :  { %2739 = vmatpush.bf16.msra.mxu0 %v4022_v58  ;;  %v1747_v6 = vpop.f32.mrf.mxu0  ;;  %2712 = vmatpush.bf16.msrb.mxu2 %v4290_v4  ;;  %v4986_v58 = vld [vmem:[#allocation4 + $0x394] sm:$0xf0] }
 0x16b   :  { %2752 = vmatpush.bf16.msra.mxu1 %v4150_v25  ;;  %v1760_v7 = vpop.f32.mrf.mxu1  ;;  %v1748_v57 = vadd.f32 %v1747_v6, %v1735_v5  ;;  %v4310_v25 = vor.u32 %v4944_v54, %v4307_v55  ;;  %v4466_v45 = vor.u32 %v4986_v58, %v4465_v42  ;;  %v4974_v4 = vld [vmem:[#allocation4 + $0x334] sm:$0xf0]  ;;  %v5291_v6 = vld [vmem:[%s5418_s4] sm:$0xf] }
 0x16c   :  { %v4418_v5 = vor.u32 %v4974_v4, %v4417_v59  ;;  %v1930_v54 = vperm.slane %v5291_v6, 2  ;;  %v5006_v42 = vld [vmem:[%s5419_s5 + $0x38] sm:$0xff]  ;;  %v1931_v56 = vperm.slane %v5291_v6, 3 }
 0x16d   :  { %2740 = vmatmul.bf16.vlgmr.msra.gmra.mxu0 %v5240_v32  ;;  %v4387_v32 = vld [vmem:[#allocation4 + $0x2f8] sm:$0xf0]  ;;  %v1761_v19 = vadd.f32 %v1760_v7, %v1748_v57  ;;  %v4970_v7 = vld [vmem:[#allocation4 + $0x314] sm:$0xf0]  ;;  %v1928_v57 = vperm.slane %v5291_v6, 0 }
 0x16e   :  { %2753 = vmatmul.bf16.vlgmr.msra.gmra.mxu1 %v5245_v18  ;;  %v4390_v18 = vor.u32 %v4964_v12, %v4387_v32  ;;  %2713 = vmatpush.bf16.msrb.mxu2 %v4274_v13  ;;  %v4996_v12 = vld [vmem:[#allocation4 + $0x3ec] sm:$0xf]  ;;  %v4515_v32 = vld [vmem:[#allocation4 + $0x3f8] sm:$0xf0]  ;;  %v4402_v13 = vor.u32 %v4970_v7, %v4401_v11 }
 0x16f   :  { %3052 = vmatpush.bf16.msrb.mxu0 %v5006_v42  ;;  %v5010_v7 = vld [vmem:[%s5419_s5 + $0x58] sm:$0xff]  ;;  %v5023_v42 = vld [vmem:[%s5419_s5 + $0xc0] sm:$0xff] }
 0x171   :  { %2714 = vmatmul.bf16.vlgmr.msrb.gmra.mxu2 %v5273_v21 }
 0x172   :  { %v1773_v20 = vpop.f32.mrf.mxu2  ;;  %2758 = vmatpush.bf16.msra.mxu2 %v4390_v18  ;;  %v1749_v26 = vpop.f32.mrf.mxu0  ;;  %v4518_v18 = vor.u32 %v4996_v12, %v4515_v32  ;;  %v5022_v12 = vld [vmem:[%s5419_s5 + $0xb8] sm:$0xff]  ;;  %v5009_v32 = vld [vmem:[%s5419_s5 + $0x50] sm:$0xff] }
 0x173   :  { %v1774_v14 = vadd.f32 %v1773_v20, %v1761_v19  ;;  %v1786_v22 = vpop.f32.mrf.mxu3  ;;  %v1762_v27 = vpop.f32.mrf.mxu1  ;;  %v4988_v26 = vld [vmem:[#allocation4 + $0x3ac] sm:$0xf]  ;;  %3053 = vmatpush.bf16.msrb.mxu0 %v5005_v8 }
 0x174   :  { %v4984_v27 = vld [vmem:[#allocation4 + $0x38c] sm:$0xf] }
 0x175   :  { %v1787_v29 = vadd.f32 %v1786_v22, %v1774_v14  ;;  %v4502_v14 = vor.u32 %v4992_v23, %v4499_v16  ;;  %v5008_v16 = vld [vmem:[%s5419_s5 + $0x48] sm:$0xff] }
 0x176   :  { %2759 = vmatpush.bf16.msra.mxu2 %v4374_v31  ;;  %v4483_v31 = vld [vmem:[#allocation4 + $0x3b8] sm:$0xf0] }
 0x177   :  { %v1793_v17 = vmax.f32 %v1787_v29, 0.0  ;;  %v4470_v29 = vor.u32 %v4984_v27, %v4467_v28 }
 0x179   :  { %v5284_v39 = vpack.c.bf16 %v1793_v17, %v1793_v17  ;;  %v1929_v17 = vperm.slane %v5291_v6, 1  ;;  %v5011_v6 = vld [vmem:[%s5419_s5 + $0x60] sm:$0xff] }
 0x17a   :  { %v1775_v33 = vpop.f32.mrf.mxu2  ;;  %2760 = vmatpush.bf16.msra.mxu2 %v4358_v37  ;;  %v4454_v37 = vor.u32 %v4980_v30, %v4451_v36 }
 0x17b   :  { %v1788_v43 = vpop.f32.mrf.mxu3  ;;  %2623 = vmatmul.bf16.vlgmr.msrb.gmra.mxu3 %v5284_v39 }
 0x17c   :  { %2719 = vmatpush.bf16.msrb.mxu3 %v4514_v34  ;;  %v4972_v43 = vld [vmem:[#allocation4 + $0x32c] sm:$0xf] }
 0x17e   :  { %2761 = vmatpush.bf16.msra.mxu2 %v4342_v46  ;;  %v4419_v46 = vld [vmem:[#allocation4 + $0x338] sm:$0xf0] }
 0x17f   :  { %v4422_v48 = vor.u32 %v4972_v43, %v4419_v46 }
 0x180   :  { %2720 = vmatpush.bf16.msrb.mxu3 %v4498_v47 }
 0x182   :  { %2762 = vmatpush.bf16.msra.mxu2 %v4326_v52  ;;  %v4406_v52 = vor.u32 %v4968_v40, %v4403_v51  ;;  %v5025_v51 = vld [vmem:[%s5419_s5 + $0xd0] sm:$0xff] }
 0x184   :  { %2721 = vmatpush.bf16.msrb.mxu3 %v4482_v53 }
 0x186   :  { %2763 = vmatpush.bf16.msra.mxu2 %v4310_v25 }
 0x188   :  { %2722 = vmatpush.bf16.msrb.mxu3 %v4466_v45 }
 0x18a   :  { %v2585_v1 = vpop.f32.mrf.mxu0  ;;  %2764 = vmatpush.bf16.msra.mxu2 %v4294_v62  ;;  %v5014_v62 = vld [vmem:[%s5419_s5 + $0x78] sm:$0xff] }
 0x18b   :  { %2675 = vmatmul.bf16.vlgmr.msra.gmra.mxu3 %v5284_v39  ;;  %v2586_v19 = vadd.f32 %v2585_v1, %v1928_v57  ;;  %3065 = vmatpush.bf16.msrb.mxu1 %v5014_v62  ;;  %v5013_v1 = vld [vmem:[%s5419_s5 + $0x70] sm:$0xff] }
 0x18c   :  { %2723 = vmatpush.bf16.msrb.mxu3 %v4450_v63  ;;  %v5002_v63 = vld [vmem:[%s5419_s5 + $0x18] sm:$0xff]  ;;  %v5021_v57 = vld [vmem:[%s5419_s5 + $0xb0] sm:$0xff] }
 0x18e   :  { %2765 = vmatpush.bf16.msra.mxu2 %v4278_v50  ;;  %v5012_v50 = vld [vmem:[%s5419_s5 + $0x68] sm:$0xff] }
 0x18f   :  { %3066 = vmatpush.bf16.msrb.mxu1 %v5013_v1 }
 0x190   :  { %2724 = vmatpush.bf16.msrb.mxu3 %v4434_v3 }
 0x191   :  { %2766 = vmatmul.bf16.vlgmr.msra.gmra.mxu2 %v5273_v21  ;;  %v2598_v20 = vpop.f32.mrf.mxu1  ;;  %v4486_v21 = vor.u32 %v4988_v26, %v4483_v31  ;;  %v5019_v26 = vld [vmem:[%s5419_s5 + $0xa0] sm:$0xff]  ;;  %v5018_v31 = vld [vmem:[%s5419_s5 + $0x98] sm:$0xff] }
 0x192   :  { %v2587_v10 = vpop.f32.mrf.mxu0  ;;  %v5295_v22 = vadd.f32 %v2598_v20, %v2586_v19  ;;  %3078 = vmatpush.bf16.msrb.mxu2 %v5022_v12  ;;  %v5020_v19 = vld [vmem:[%s5419_s5 + $0xa8] sm:$0xff] }
 0x193   :  { %3067 = vmatpush.bf16.msrb.mxu1 %v5012_v50  ;;  %v4999_v10 = vld [vmem:[%s5419_s5] sm:$0xff] }
 0x194   :  { %2725 = vmatpush.bf16.msrb.mxu3 %v4418_v5 }
 0x196   :  { %3079 = vmatpush.bf16.msrb.mxu2 %v5021_v57 }
 0x197   :  { %3068 = vmatpush.bf16.msrb.mxu1 %v5011_v6 }
 0x198   :  { %2726 = vmatpush.bf16.msrb.mxu3 %v4402_v13 }
 0x199   :  { %v2600_v15 = vpop.f32.mrf.mxu1 }
 0x19a   :  { %3080 = vmatpush.bf16.msrb.mxu2 %v5020_v19  ;;  %v5016_v15 = vld [vmem:[%s5419_s5 + $0x88] sm:$0xff] }
 0x19b   :  { %2727 = vmatmul.bf16.vlgmr.msrb.gmra.mxu3 %v5284_v39  ;;  %3069 = vmatpush.bf16.msrb.mxu1 %v5010_v7 }
 0x19c   :  { %2771 = vmatpush.bf16.msra.mxu3 %v4518_v18 }
 0x19e   :  { %3081 = vmatpush.bf16.msrb.mxu2 %v5019_v26 }
 0x19f   :  { %3070 = vmatpush.bf16.msrb.mxu1 %v5009_v32 }
 0x1a0   :  { %2772 = vmatpush.bf16.msra.mxu3 %v4502_v14  ;;  %v5007_v14 = vld [vmem:[%s5419_s5 + $0x40] sm:$0xff] }
 0x1a2   :  { %3082 = vmatpush.bf16.msrb.mxu2 %v5018_v31 }
 0x1a3   :  { %3071 = vmatpush.bf16.msrb.mxu1 %v5008_v16 }
 0x1a4   :  { %2773 = vmatpush.bf16.msra.mxu3 %v4486_v21  ;;  %v5017_v21 = vld [vmem:[%s5419_s5 + $0x90] sm:$0xff] }
 0x1a6   :  { %3083 = vmatpush.bf16.msrb.mxu2 %v5017_v21 }
 0x1a7   :  { %3072 = vmatpush.bf16.msrb.mxu1 %v5007_v14 }
 0x1a8   :  { %2774 = vmatpush.bf16.msra.mxu3 %v4470_v29 }
 0x1aa   :  { %v2637_v34 = vpop.f32.mrf.mxu0  ;;  %3084 = vmatpush.bf16.msrb.mxu2 %v5016_v15 }
 0x1ab   :  { %v2638_v44 = vadd.f32 %v2637_v34, %v1929_v17  ;;  %v2650_v33 = vpop.f32.mrf.mxu1  ;;  %v5030_v34 = vld [vmem:[%s5419_s5 + $0xf8] sm:$0xff] }
 0x1ac   :  { %2775 = vmatpush.bf16.msra.mxu3 %v4454_v37  ;;  %v5015_v37 = vld [vmem:[%s5419_s5 + $0x80] sm:$0xff] }
 0x1ad   :  { %v5299_v47 = vadd.f32 %v2650_v33, %v2638_v44  ;;  %v5028_v44 = vld [vmem:[%s5419_s5 + $0xe8] sm:$0xff] }
 0x1ae   :  { %3085 = vmatpush.bf16.msrb.mxu2 %v5015_v37 }
 0x1b0   :  { %2776 = vmatpush.bf16.msra.mxu3 %v4438_v41  ;;  %v5027_v41 = vld [vmem:[%s5419_s5 + $0xe0] sm:$0xff] }
 0x1b2   :  { %v2639_v49 = vpop.f32.mrf.mxu0 }
 0x1b3   :  { %v2652_v53 = vpop.f32.mrf.mxu1 }
 0x1b4   :  { %2777 = vmatpush.bf16.msra.mxu3 %v4422_v48  ;;  %v5026_v48 = vld [vmem:[%s5419_s5 + $0xd8] sm:$0xff] }
 0x1b8   :  { %2778 = vmatpush.bf16.msra.mxu3 %v4406_v52 }
 0x1bb   :  { %2779 = vmatmul.bf16.vlgmr.msra.gmra.mxu3 %v5284_v39  ;;  %v5004_v39 = vld [vmem:[%s5419_s5 + $0x28] sm:$0xff] }
 0x1bc   :  { %3054 = vmatpush.bf16.msrb.mxu0 %v5004_v39  ;;  %3091 = vmatpush.bf16.msrb.mxu3 %v5030_v34 }
 0x1c0   :  { %3055 = vmatpush.bf16.msrb.mxu0 %v5003_v61 }
 0x1c4   :  { %3056 = vmatpush.bf16.msrb.mxu0 %v5002_v63 }
 0x1c8   :  { %3057 = vmatpush.bf16.msrb.mxu0 %v5001_v0 }
 0x1ca   :  { %v2689_v55 = vpop.f32.mrf.mxu0 }
 0x1cb   :  { %v2690_v58 = vadd.f32 %v2689_v55, %v1930_v54  ;;  %v2702_v25 = vpop.f32.mrf.mxu1 }
 0x1cc   :  { %3058 = vmatpush.bf16.msrb.mxu0 %v5000_v2 }
 0x1cd   :  { %v5306_v45 = vadd.f32 %v2702_v25, %v2690_v58 }
 0x1d0   :  { %3059 = vmatpush.bf16.msrb.mxu0 %v4999_v10 }
 0x1d2   :  { %v2691_v9 = vpop.f32.mrf.mxu0 }
 0x1d3   :  { %v2704_v60 = vpop.f32.mrf.mxu1 }
 0x1d4   :  { %v2611_v24 = vpop.f32.mrf.mxu2 }
 0x1d5   :  { %v2612_v28 = vadd.f32 %v2611_v24, %v5295_v22  ;;  %v5029_v22 = vld [vmem:[%s5419_s5 + $0xf0] sm:$0xff] }
 0x1d6   :  { %3092 = vmatpush.bf16.msrb.mxu3 %v5029_v22 }
 0x1da   :  { %3093 = vmatpush.bf16.msrb.mxu3 %v5028_v44 }
 0x1dc   :  { %v2613_v59 = vpop.f32.mrf.mxu2 }
 0x1dd   :  { %v5035_v59 = vld [vmem:[%s5420_s6] ss:$0 sm:$0xff] }
 0x1de   :  { %3094 = vmatpush.bf16.msrb.mxu3 %v5027_v41 }
 0x1e2   :  { %3095 = vmatpush.bf16.msrb.mxu3 %v5026_v48 }
 0x1e4   :  { %v2663_v18 = vpop.f32.mrf.mxu2 }
 0x1e5   :  { %v2664_v33 = vadd.f32 %v2663_v18, %v5299_v47  ;;  %v5024_v47 = vld [vmem:[%s5419_s5 + $0xc8] sm:$0xff] }
 0x1e6   :  { %3096 = vmatpush.bf16.msrb.mxu3 %v5025_v51 }
 0x1ea   :  { %v2741_v3 = vpop.f32.mrf.mxu0  ;;  %3097 = vmatpush.bf16.msrb.mxu3 %v5024_v47 }
 0x1eb   :  { %v2742_v4 = vadd.f32 %v2741_v3, %v1931_v56  ;;  %v2754_v5 = vpop.f32.mrf.mxu1 }
 0x1ec   :  { %v2665_v20 = vpop.f32.mrf.mxu2 }
 0x1ed   :  { %v5342_v11 = vadd.f32 %v2754_v5, %v2742_v4 }
 0x1ee   :  { %3098 = vmatpush.bf16.msrb.mxu3 %v5023_v42 }
 0x1f2   :  { %v2743_v13 = vpop.f32.mrf.mxu0 }
 0x1f3   :  { %v2756_v23 = vpop.f32.mrf.mxu1 }
 0x1f4   :  { %v2715_v27 = vpop.f32.mrf.mxu2 }
 0x1f5   :  { %v2716_v54 = vadd.f32 %v2715_v27, %v5306_v45 }
 0x1fc   :  { %v2717_v36 = vpop.f32.mrf.mxu2 }
 0x1fe   :  { %v2624_v29 = vpop.f32.mrf.mxu3 }
 0x1ff   :  { %v2625_v30 = vadd.f32 %v2624_v29, %v2612_v28 }
 0x201   :  { %v2784_v17 = vmax.f32 %v2625_v30, 0.0 }
 0x203   :  { %v2788_v35 = vpack.c.bf16 %v2784_v17, %v2784_v17 }
 0x205   :  { %3060 = vmatmul.bf16.vlgmr.msrb.gmra.mxu0 %v2788_v35 }
 0x206   :  { %v2626_v38 = vpop.f32.mrf.mxu3 }
 0x20e   :  { %v2676_v43 = vpop.f32.mrf.mxu3 }
 0x20f   :  { %v2677_v46 = vadd.f32 %v2676_v43, %v2664_v33 }
 0x211   :  { %v2785_v49 = vmax.f32 %v2677_v46, 0.0 }
 0x213   :  { %v2789_v40 = vpack.c.bf16 %v2785_v49, %v2785_v49 }
 0x214   :  { %v2767_v52 = vpop.f32.mrf.mxu2 }
 0x215   :  { %3073 = vmatmul.bf16.vlgmr.msrb.gmra.mxu1 %v2789_v40  ;;  %v2768_v60 = vadd.f32 %v2767_v52, %v5342_v11 }
 0x216   :  { %v2678_v53 = vpop.f32.mrf.mxu3 }
 0x21c   :  { %v2769_v55 = vpop.f32.mrf.mxu2 }
 0x21e   :  { %v2728_v58 = vpop.f32.mrf.mxu3 }
 0x21f   :  { %v2729_v25 = vadd.f32 %v2728_v58, %v2716_v54 }
 0x221   :  { %v2786_v8 = vmax.f32 %v2729_v25, 0.0 }
 0x223   :  { %v2790_v9 = vpack.c.bf16 %v2786_v8, %v2786_v8 }
 0x225   :  { %3086 = vmatmul.bf16.vlgmr.msrb.gmra.mxu2 %v2790_v9 }
 0x226   :  { %v2730_v39 = vpop.f32.mrf.mxu3 }
 0x23e   :  { %v2780_v61 = vpop.f32.mrf.mxu3 }
 0x23f   :  { %v2781_v62 = vadd.f32 %v2780_v61, %v2768_v60 }
 0x241   :  { %v2787_v63 = vmax.f32 %v2781_v62, 0.0 }
 0x243   :  { %v2791_v24 = vpack.c.bf16 %v2787_v63, %v2787_v63 }
 0x245   :  { %3099 = vmatmul.bf16.vlgmr.msrb.gmra.mxu3 %v2791_v24 }
 0x246   :  { %v2782_v45 = vpop.f32.mrf.mxu3 }
 0x282   :  { %v3061_v0 = vpop.f32.mrf.mxu0 }
 0x283   :  { %v3062_v4 = vadd.f32 %v5035_v59, %v3061_v0 }
 0x28a   :  { %v3063_v1 = vpop.f32.mrf.mxu0 }
 0x292   :  { %v3074_v56 = vpop.f32.mrf.mxu1 }
 0x293   :  { %v3075_v5 = vadd.f32 %v3074_v56, %v3062_v4 }
 0x29a   :  { %v3076_v2 = vpop.f32.mrf.mxu1 }
 0x2a8   :  { %v3087_v50 = vpop.f32.mrf.mxu2 }
 0x2a9   :  { %v3088_v10 = vadd.f32 %v3087_v50, %v3075_v5 }
 0x2b0   :  { %v3089_v3 = vpop.f32.mrf.mxu2 }
 0x2c8   :  { %v3100_v6 = vpop.f32.mrf.mxu3 }
 0x2c9   :  { %v3101_v11 = vadd.f32 %v3100_v6, %v3088_v10 }
 0x2cb   :  { %3104 = vst [vmem:[%s5421_s7] sm:$0xff] %v3101_v11 }
 0x2d0   :  { %v3102_v7 = vpop.f32.mrf.mxu3 }
 0x2d1   :  { %3109 = vsyncpa [#allocation3], 1 }
 0x2d2   :  { %3110 = vsyncpa [#allocation5], 1 }

</bundles_post_ra>
